<compile_context>
chip_gen: v6e
topology: v6e:2x2x1
jax: 0.10.0
libtpu: 0.0.40
codegen_flags: <defaults>
</compile_context>

<pallas_src>
import jax
import jax.numpy as jnp
from jax.experimental import pallas as pl
from jax.experimental.pallas import tpu as pltpu

IN_F = 2
HID = 10
OUT_F = 1

# Packed-parameter layout (single f32 SMEM array).
W1_OFF = 0                      # (10, 2)  row-major -> idx = 2*j + k
B1_OFF = W1_OFF + HID * IN_F    # (10,)
W2_OFF = B1_OFF + HID           # (10, 10) row-major -> idx = 10*j + k
B2_OFF = W2_OFF + HID * HID     # (10,)
W3_OFF = B2_OFF + HID           # (10,)    weights of the single output neuron
B3_OFF = W3_OFF + HID           # (1,)
PARAM_LEN = 160                 # 151 used, padded for tidiness

MAX_TILE_R = 512                # 512 rows * 128 lanes = 65536 samples / step
TARGET_TILES = 8                # keep >= several grid steps (v7x dual-TC)


def _round_up(v, m):
    return ((v + m - 1) // m) * m


def mlp_kernel(p_ref, x_ref, o_ref):
    # x_ref: (2, TILE_R, 128) — two dense feature planes, batch on (sublane, lane).
    x0 = x_ref[0]                       # (TILE_R, 128)
    x1 = x_ref[1]                       # (TILE_R, 128)

    # Layer 1 (2 -> 10) + ReLU: scalar-broadcast VPU FMAs, scalars from SMEM.
    h1 = []
    for j in range(HID):
        a = x0 * p_ref[W1_OFF + 2 * j] + x1 * p_ref[W1_OFF + 2 * j + 1]
        h1.append(jnp.maximum(a + p_ref[B1_OFF + j], 0.0))

    # Layer 2 (10 -> 10) + ReLU: 10x10 unrolled scalar FMAs on dense slabs.
    h2 = []
    for j in range(HID):
        acc = h1[0] * p_ref[W2_OFF + HID * j]
        for k in range(1, HID):
            acc = acc + h1[k] * p_ref[W2_OFF + HID * j + k]
        h2.append(jnp.maximum(acc + p_ref[B2_OFF + j], 0.0))

    # Layer 3 (10 -> 1): unrolled scalar FMAs, result already lane/sublane dense.
    out = h2[0] * p_ref[W3_OFF]
    for k in range(1, HID):
        out = out + h2[k] * p_ref[W3_OFF + k]
    o_ref[...] = (out + p_ref[B3_OFF]).astype(o_ref.dtype)


def pack_params(params):
    w1, b1, w2, b2, w3, b3 = params
    flat = jnp.concatenate([
        jnp.ravel(w1).astype(jnp.float32),   # 20
        jnp.ravel(b1).astype(jnp.float32),   # 10
        jnp.ravel(w2).astype(jnp.float32),   # 100
        jnp.ravel(b2).astype(jnp.float32),   # 10
        jnp.ravel(w3).astype(jnp.float32),   # 10
        jnp.ravel(b3).astype(jnp.float32),   # 1
    ])
    return jnp.pad(flat, (0, PARAM_LEN - flat.shape[0]))


def _plan_tiles(n):
    """Rows of 128 samples; tile_r multiple of 8, capped, ~TARGET_TILES steps."""
    r = _round_up(max(n, 1), 128) // 128
    tile_r = _round_up(-(-r // TARGET_TILES), 8)
    tile_r = max(8, min(MAX_TILE_R, tile_r))
    num_tiles = -(-r // tile_r)
    return tile_r, num_tiles


def circle_model_forward(x, params):
    n = x.shape[0]
    tile_r, num_tiles = _plan_tiles(n)
    r_pad = num_tiles * tile_r
    n_pad = r_pad * 128

    # Single fused pad + transpose + reshape into the kernel's dense 2D layout.
    xT = jnp.pad(x.astype(jnp.float32).T, ((0, 0), (0, n_pad - n)))   # (2, n_pad)
    x3 = xT.reshape(IN_F, r_pad, 128)                                 # (2, R, 128)
    p = pack_params(params)                                           # (160,) SMEM

    flops = 2 * n_pad * (IN_F * HID + HID * HID + HID * OUT_F)
    bytes_accessed = n_pad * (IN_F + OUT_F) * 4 + PARAM_LEN * 4

    o3 = pl.pallas_call(
        mlp_kernel,
        out_shape=jax.ShapeDtypeStruct((r_pad, 128), jnp.float32),
        grid_spec=pltpu.PrefetchScalarGridSpec(
            num_scalar_prefetch=0,
            grid=(num_tiles,),
            in_specs=[
                pl.BlockSpec(memory_space=pltpu.MemorySpace.SMEM),      # packed params
                pl.BlockSpec((IN_F, tile_r, 128), lambda i: (0, i, 0)), # streamed x tile
            ],
            out_specs=pl.BlockSpec((tile_r, 128), lambda i: (i, 0)),
        ),
        compiler_params=pltpu.CompilerParams(
            dimension_semantics=("parallel",),        # shard batch tiles on v7x dual-TC
            vmem_limit_bytes=32 * 1024 * 1024,        # fits v5e/v6e/v7x comfortably
        ),
        cost_estimate=pl.CostEstimate(
            flops=flops, transcendentals=0, bytes_accessed=bytes_accessed),
    )(p, x3)

    # Back to PyTorch layout (N, 1), dropping padded samples.
    return o3.reshape(-1)[:n].reshape(n, 1)


def init_params(key):
    """Deterministic init mimicking PyTorch Linear default U[-1/sqrt(fan_in), +]."""
    def linear(k, fan_in, fan_out):
        kw, kb = jax.random.split(k)
        bound = 1.0 / (fan_in ** 0.5)
        w = jax.random.uniform(kw, (fan_out, fan_in), jnp.float32, -bound, bound)
        b = jax.random.uniform(kb, (fan_out,), jnp.float32, -bound, bound)
        return w, b

    k1, k2, k3 = jax.random.split(key, 3)
    w1, b1 = linear(k1, 2, 10)      # (10, 2), (10,)
    w2, b2 = linear(k2, 10, 10)     # (10, 10), (10,)
    w3, b3 = linear(k3, 10, 1)      # (1, 10), (1,)
    return (w1, b1, w2, b2, w3, b3)


def reference_forward(x, params):
    w1, b1, w2, b2, w3, b3 = params
    hp = jax.lax.Precision.HIGHEST   # keep the reference in true f32
    h = jnp.maximum(jnp.dot(x, w1.T, precision=hp) + b1, 0.0)
    h = jnp.maximum(jnp.dot(h, w2.T, precision=hp) + b2, 0.0)
    return jnp.dot(h, w3.T, precision=hp) + b3


if __name__ == "__main__":
    key = jax.random.PRNGKey(0)
    kx, kp = jax.random.split(key)
    params = init_params(kp)

    # Small single-tile case and a small multi-tile case (exercises the grid).
    for batch in (8, 2000):
        x = jax.random.normal(jax.random.fold_in(kx, batch), (batch, IN_F), jnp.float32)
        out = jax.block_until_ready(circle_model_forward(x, params))
        ref = reference_forward(x, params)
        assert out.shape == (batch, 1), out.shape
        assert jnp.allclose(out, ref, atol=2e-5, rtol=1e-4), (
            float(jnp.max(jnp.abs(out - ref))))

    print("KERNEL_OK")
</pallas_src>

<mosaic_0001>
module attributes {stable_mosaic.version = 11 : i64} {
  func.func @mlp_kernel(%arg0: i32, %arg1: memref<160xf32, #tpu.memory_space<smem>>, %arg2: memref<2x8x128xf32, #tpu.memory_space<vmem>>, %arg3: memref<8x128xf32, #tpu.memory_space<vmem>>) attributes {dimension_semantics = [#tpu.dimension_semantics<parallel>], iteration_bounds = array<i64: 1>, scalar_prefetch = 0 : i64, scratch_operands = 0 : i64, tpu.core_type = #tpu.core_type<tc>, window_params = [{transform_indices = @transform_0, window_bounds = array<i64: 160>}, {transform_indices = @transform_1, window_bounds = array<i64: 2, 8, 128>}, {transform_indices = @transform_2, window_bounds = array<i64: 8, 128>}]} {
    %c0 = arith.constant 0 : index
    %c0_0 = arith.constant 0 : index
    %c0_1 = arith.constant 0 : index
    %0 = vector.load %arg2[%c0, %c0_0, %c0_1] : memref<2x8x128xf32, #tpu.memory_space<vmem>>, vector<1x8x128xf32>
    %1 = vector.shape_cast %0 : vector<1x8x128xf32> to vector<8x128xf32>
    %c1 = arith.constant 1 : index
    %c0_2 = arith.constant 0 : index
    %c0_3 = arith.constant 0 : index
    %2 = vector.load %arg2[%c1, %c0_2, %c0_3] : memref<2x8x128xf32, #tpu.memory_space<vmem>>, vector<1x8x128xf32>
    %3 = vector.shape_cast %2 : vector<1x8x128xf32> to vector<8x128xf32>
    %c0_4 = arith.constant 0 : index
    %4 = memref.load %arg1[%c0_4] : memref<160xf32, #tpu.memory_space<smem>>
    %5 = vector.broadcast %4 : f32 to vector<8x128xf32>
    %6 = arith.mulf %1, %5 : vector<8x128xf32>
    %c1_5 = arith.constant 1 : index
    %7 = memref.load %arg1[%c1_5] : memref<160xf32, #tpu.memory_space<smem>>
    %8 = vector.broadcast %7 : f32 to vector<8x128xf32>
    %9 = arith.mulf %3, %8 : vector<8x128xf32>
    %10 = arith.addf %6, %9 : vector<8x128xf32>
    %c20 = arith.constant 20 : index
    %11 = memref.load %arg1[%c20] : memref<160xf32, #tpu.memory_space<smem>>
    %12 = vector.broadcast %11 : f32 to vector<8x128xf32>
    %13 = arith.addf %10, %12 : vector<8x128xf32>
    %cst = arith.constant 0.000000e+00 : f32
    %14 = vector.broadcast %cst : f32 to vector<8x128xf32>
    %15 = arith.maximumf %13, %14 : vector<8x128xf32>
    %c2 = arith.constant 2 : index
    %16 = memref.load %arg1[%c2] : memref<160xf32, #tpu.memory_space<smem>>
    %17 = vector.broadcast %16 : f32 to vector<8x128xf32>
    %18 = arith.mulf %1, %17 : vector<8x128xf32>
    %c3 = arith.constant 3 : index
    %19 = memref.load %arg1[%c3] : memref<160xf32, #tpu.memory_space<smem>>
    %20 = vector.broadcast %19 : f32 to vector<8x128xf32>
    %21 = arith.mulf %3, %20 : vector<8x128xf32>
    %22 = arith.addf %18, %21 : vector<8x128xf32>
    %c21 = arith.constant 21 : index
    %23 = memref.load %arg1[%c21] : memref<160xf32, #tpu.memory_space<smem>>
    %24 = vector.broadcast %23 : f32 to vector<8x128xf32>
    %25 = arith.addf %22, %24 : vector<8x128xf32>
    %cst_6 = arith.constant 0.000000e+00 : f32
    %26 = vector.broadcast %cst_6 : f32 to vector<8x128xf32>
    %27 = arith.maximumf %25, %26 : vector<8x128xf32>
    %c4 = arith.constant 4 : index
    %28 = memref.load %arg1[%c4] : memref<160xf32, #tpu.memory_space<smem>>
    %29 = vector.broadcast %28 : f32 to vector<8x128xf32>
    %30 = arith.mulf %1, %29 : vector<8x128xf32>
    %c5 = arith.constant 5 : index
    %31 = memref.load %arg1[%c5] : memref<160xf32, #tpu.memory_space<smem>>
    %32 = vector.broadcast %31 : f32 to vector<8x128xf32>
    %33 = arith.mulf %3, %32 : vector<8x128xf32>
    %34 = arith.addf %30, %33 : vector<8x128xf32>
    %c22 = arith.constant 22 : index
    %35 = memref.load %arg1[%c22] : memref<160xf32, #tpu.memory_space<smem>>
    %36 = vector.broadcast %35 : f32 to vector<8x128xf32>
    %37 = arith.addf %34, %36 : vector<8x128xf32>
    %cst_7 = arith.constant 0.000000e+00 : f32
    %38 = vector.broadcast %cst_7 : f32 to vector<8x128xf32>
    %39 = arith.maximumf %37, %38 : vector<8x128xf32>
    %c6 = arith.constant 6 : index
    %40 = memref.load %arg1[%c6] : memref<160xf32, #tpu.memory_space<smem>>
    %41 = vector.broadcast %40 : f32 to vector<8x128xf32>
    %42 = arith.mulf %1, %41 : vector<8x128xf32>
    %c7 = arith.constant 7 : index
    %43 = memref.load %arg1[%c7] : memref<160xf32, #tpu.memory_space<smem>>
    %44 = vector.broadcast %43 : f32 to vector<8x128xf32>
    %45 = arith.mulf %3, %44 : vector<8x128xf32>
    %46 = arith.addf %42, %45 : vector<8x128xf32>
    %c23 = arith.constant 23 : index
    %47 = memref.load %arg1[%c23] : memref<160xf32, #tpu.memory_space<smem>>
    %48 = vector.broadcast %47 : f32 to vector<8x128xf32>
    %49 = arith.addf %46, %48 : vector<8x128xf32>
    %cst_8 = arith.constant 0.000000e+00 : f32
    %50 = vector.broadcast %cst_8 : f32 to vector<8x128xf32>
    %51 = arith.maximumf %49, %50 : vector<8x128xf32>
    %c8 = arith.constant 8 : index
    %52 = memref.load %arg1[%c8] : memref<160xf32, #tpu.memory_space<smem>>
    %53 = vector.broadcast %52 : f32 to vector<8x128xf32>
    %54 = arith.mulf %1, %53 : vector<8x128xf32>
    %c9 = arith.constant 9 : index
    %55 = memref.load %arg1[%c9] : memref<160xf32, #tpu.memory_space<smem>>
    %56 = vector.broadcast %55 : f32 to vector<8x128xf32>
    %57 = arith.mulf %3, %56 : vector<8x128xf32>
    %58 = arith.addf %54, %57 : vector<8x128xf32>
    %c24 = arith.constant 24 : index
    %59 = memref.load %arg1[%c24] : memref<160xf32, #tpu.memory_space<smem>>
    %60 = vector.broadcast %59 : f32 to vector<8x128xf32>
    %61 = arith.addf %58, %60 : vector<8x128xf32>
    %cst_9 = arith.constant 0.000000e+00 : f32
    %62 = vector.broadcast %cst_9 : f32 to vector<8x128xf32>
    %63 = arith.maximumf %61, %62 : vector<8x128xf32>
    %c10 = arith.constant 10 : index
    %64 = memref.load %arg1[%c10] : memref<160xf32, #tpu.memory_space<smem>>
    %65 = vector.broadcast %64 : f32 to vector<8x128xf32>
    %66 = arith.mulf %1, %65 : vector<8x128xf32>
    %c11 = arith.constant 11 : index
    %67 = memref.load %arg1[%c11] : memref<160xf32, #tpu.memory_space<smem>>
    %68 = vector.broadcast %67 : f32 to vector<8x128xf32>
    %69 = arith.mulf %3, %68 : vector<8x128xf32>
    %70 = arith.addf %66, %69 : vector<8x128xf32>
    %c25 = arith.constant 25 : index
    %71 = memref.load %arg1[%c25] : memref<160xf32, #tpu.memory_space<smem>>
    %72 = vector.broadcast %71 : f32 to vector<8x128xf32>
    %73 = arith.addf %70, %72 : vector<8x128xf32>
    %cst_10 = arith.constant 0.000000e+00 : f32
    %74 = vector.broadcast %cst_10 : f32 to vector<8x128xf32>
    %75 = arith.maximumf %73, %74 : vector<8x128xf32>
    %c12 = arith.constant 12 : index
    %76 = memref.load %arg1[%c12] : memref<160xf32, #tpu.memory_space<smem>>
    %77 = vector.broadcast %76 : f32 to vector<8x128xf32>
    %78 = arith.mulf %1, %77 : vector<8x128xf32>
    %c13 = arith.constant 13 : index
    %79 = memref.load %arg1[%c13] : memref<160xf32, #tpu.memory_space<smem>>
    %80 = vector.broadcast %79 : f32 to vector<8x128xf32>
    %81 = arith.mulf %3, %80 : vector<8x128xf32>
    %82 = arith.addf %78, %81 : vector<8x128xf32>
    %c26 = arith.constant 26 : index
    %83 = memref.load %arg1[%c26] : memref<160xf32, #tpu.memory_space<smem>>
    %84 = vector.broadcast %83 : f32 to vector<8x128xf32>
    %85 = arith.addf %82, %84 : vector<8x128xf32>
    %cst_11 = arith.constant 0.000000e+00 : f32
    %86 = vector.broadcast %cst_11 : f32 to vector<8x128xf32>
    %87 = arith.maximumf %85, %86 : vector<8x128xf32>
    %c14 = arith.constant 14 : index
    %88 = memref.load %arg1[%c14] : memref<160xf32, #tpu.memory_space<smem>>
    %89 = vector.broadcast %88 : f32 to vector<8x128xf32>
    %90 = arith.mulf %1, %89 : vector<8x128xf32>
    %c15 = arith.constant 15 : index
    %91 = memref.load %arg1[%c15] : memref<160xf32, #tpu.memory_space<smem>>
    %92 = vector.broadcast %91 : f32 to vector<8x128xf32>
    %93 = arith.mulf %3, %92 : vector<8x128xf32>
    %94 = arith.addf %90, %93 : vector<8x128xf32>
    %c27 = arith.constant 27 : index
    %95 = memref.load %arg1[%c27] : memref<160xf32, #tpu.memory_space<smem>>
    %96 = vector.broadcast %95 : f32 to vector<8x128xf32>
    %97 = arith.addf %94, %96 : vector<8x128xf32>
    %cst_12 = arith.constant 0.000000e+00 : f32
    %98 = vector.broadcast %cst_12 : f32 to vector<8x128xf32>
    %99 = arith.maximumf %97, %98 : vector<8x128xf32>
    %c16 = arith.constant 16 : index
    %100 = memref.load %arg1[%c16] : memref<160xf32, #tpu.memory_space<smem>>
    %101 = vector.broadcast %100 : f32 to vector<8x128xf32>
    %102 = arith.mulf %1, %101 : vector<8x128xf32>
    %c17 = arith.constant 17 : index
    %103 = memref.load %arg1[%c17] : memref<160xf32, #tpu.memory_space<smem>>
    %104 = vector.broadcast %103 : f32 to vector<8x128xf32>
    %105 = arith.mulf %3, %104 : vector<8x128xf32>
    %106 = arith.addf %102, %105 : vector<8x128xf32>
    %c28 = arith.constant 28 : index
    %107 = memref.load %arg1[%c28] : memref<160xf32, #tpu.memory_space<smem>>
    %108 = vector.broadcast %107 : f32 to vector<8x128xf32>
    %109 = arith.addf %106, %108 : vector<8x128xf32>
    %cst_13 = arith.constant 0.000000e+00 : f32
    %110 = vector.broadcast %cst_13 : f32 to vector<8x128xf32>
    %111 = arith.maximumf %109, %110 : vector<8x128xf32>
    %c18 = arith.constant 18 : index
    %112 = memref.load %arg1[%c18] : memref<160xf32, #tpu.memory_space<smem>>
    %113 = vector.broadcast %112 : f32 to vector<8x128xf32>
    %114 = arith.mulf %1, %113 : vector<8x128xf32>
    %c19 = arith.constant 19 : index
    %115 = memref.load %arg1[%c19] : memref<160xf32, #tpu.memory_space<smem>>
    %116 = vector.broadcast %115 : f32 to vector<8x128xf32>
    %117 = arith.mulf %3, %116 : vector<8x128xf32>
    %118 = arith.addf %114, %117 : vector<8x128xf32>
    %c29 = arith.constant 29 : index
    %119 = memref.load %arg1[%c29] : memref<160xf32, #tpu.memory_space<smem>>
    %120 = vector.broadcast %119 : f32 to vector<8x128xf32>
    %121 = arith.addf %118, %120 : vector<8x128xf32>
    %cst_14 = arith.constant 0.000000e+00 : f32
    %122 = vector.broadcast %cst_14 : f32 to vector<8x128xf32>
    %123 = arith.maximumf %121, %122 : vector<8x128xf32>
    %c30 = arith.constant 30 : index
    %124 = memref.load %arg1[%c30] : memref<160xf32, #tpu.memory_space<smem>>
    %125 = vector.broadcast %124 : f32 to vector<8x128xf32>
    %126 = arith.mulf %15, %125 : vector<8x128xf32>
    %c31 = arith.constant 31 : index
    %127 = memref.load %arg1[%c31] : memref<160xf32, #tpu.memory_space<smem>>
    %128 = vector.broadcast %127 : f32 to vector<8x128xf32>
    %129 = arith.mulf %27, %128 : vector<8x128xf32>
    %130 = arith.addf %126, %129 : vector<8x128xf32>
    %c32 = arith.constant 32 : index
    %131 = memref.load %arg1[%c32] : memref<160xf32, #tpu.memory_space<smem>>
    %132 = vector.broadcast %131 : f32 to vector<8x128xf32>
    %133 = arith.mulf %39, %132 : vector<8x128xf32>
    %134 = arith.addf %130, %133 : vector<8x128xf32>
    %c33 = arith.constant 33 : index
    %135 = memref.load %arg1[%c33] : memref<160xf32, #tpu.memory_space<smem>>
    %136 = vector.broadcast %135 : f32 to vector<8x128xf32>
    %137 = arith.mulf %51, %136 : vector<8x128xf32>
    %138 = arith.addf %134, %137 : vector<8x128xf32>
    %c34 = arith.constant 34 : index
    %139 = memref.load %arg1[%c34] : memref<160xf32, #tpu.memory_space<smem>>
    %140 = vector.broadcast %139 : f32 to vector<8x128xf32>
    %141 = arith.mulf %63, %140 : vector<8x128xf32>
    %142 = arith.addf %138, %141 : vector<8x128xf32>
    %c35 = arith.constant 35 : index
    %143 = memref.load %arg1[%c35] : memref<160xf32, #tpu.memory_space<smem>>
    %144 = vector.broadcast %143 : f32 to vector<8x128xf32>
    %145 = arith.mulf %75, %144 : vector<8x128xf32>
    %146 = arith.addf %142, %145 : vector<8x128xf32>
    %c36 = arith.constant 36 : index
    %147 = memref.load %arg1[%c36] : memref<160xf32, #tpu.memory_space<smem>>
    %148 = vector.broadcast %147 : f32 to vector<8x128xf32>
    %149 = arith.mulf %87, %148 : vector<8x128xf32>
    %150 = arith.addf %146, %149 : vector<8x128xf32>
    %c37 = arith.constant 37 : index
    %151 = memref.load %arg1[%c37] : memref<160xf32, #tpu.memory_space<smem>>
    %152 = vector.broadcast %151 : f32 to vector<8x128xf32>
    %153 = arith.mulf %99, %152 : vector<8x128xf32>
    %154 = arith.addf %150, %153 : vector<8x128xf32>
    %c38 = arith.constant 38 : index
    %155 = memref.load %arg1[%c38] : memref<160xf32, #tpu.memory_space<smem>>
    %156 = vector.broadcast %155 : f32 to vector<8x128xf32>
    %157 = arith.mulf %111, %156 : vector<8x128xf32>
    %158 = arith.addf %154, %157 : vector<8x128xf32>
    %c39 = arith.constant 39 : index
    %159 = memref.load %arg1[%c39] : memref<160xf32, #tpu.memory_space<smem>>
    %160 = vector.broadcast %159 : f32 to vector<8x128xf32>
    %161 = arith.mulf %123, %160 : vector<8x128xf32>
    %162 = arith.addf %158, %161 : vector<8x128xf32>
    %c130 = arith.constant 130 : index
    %163 = memref.load %arg1[%c130] : memref<160xf32, #tpu.memory_space<smem>>
    %164 = vector.broadcast %163 : f32 to vector<8x128xf32>
    %165 = arith.addf %162, %164 : vector<8x128xf32>
    %cst_15 = arith.constant 0.000000e+00 : f32
    %166 = vector.broadcast %cst_15 : f32 to vector<8x128xf32>
    %167 = arith.maximumf %165, %166 : vector<8x128xf32>
    %c40 = arith.constant 40 : index
    %168 = memref.load %arg1[%c40] : memref<160xf32, #tpu.memory_space<smem>>
    %169 = vector.broadcast %168 : f32 to vector<8x128xf32>
    %170 = arith.mulf %15, %169 : vector<8x128xf32>
    %c41 = arith.constant 41 : index
    %171 = memref.load %arg1[%c41] : memref<160xf32, #tpu.memory_space<smem>>
    %172 = vector.broadcast %171 : f32 to vector<8x128xf32>
    %173 = arith.mulf %27, %172 : vector<8x128xf32>
    %174 = arith.addf %170, %173 : vector<8x128xf32>
    %c42 = arith.constant 42 : index
    %175 = memref.load %arg1[%c42] : memref<160xf32, #tpu.memory_space<smem>>
    %176 = vector.broadcast %175 : f32 to vector<8x128xf32>
    %177 = arith.mulf %39, %176 : vector<8x128xf32>
    %178 = arith.addf %174, %177 : vector<8x128xf32>
    %c43 = arith.constant 43 : index
    %179 = memref.load %arg1[%c43] : memref<160xf32, #tpu.memory_space<smem>>
    %180 = vector.broadcast %179 : f32 to vector<8x128xf32>
    %181 = arith.mulf %51, %180 : vector<8x128xf32>
    %182 = arith.addf %178, %181 : vector<8x128xf32>
    %c44 = arith.constant 44 : index
    %183 = memref.load %arg1[%c44] : memref<160xf32, #tpu.memory_space<smem>>
    %184 = vector.broadcast %183 : f32 to vector<8x128xf32>
    %185 = arith.mulf %63, %184 : vector<8x128xf32>
    %186 = arith.addf %182, %185 : vector<8x128xf32>
    %c45 = arith.constant 45 : index
    %187 = memref.load %arg1[%c45] : memref<160xf32, #tpu.memory_space<smem>>
    %188 = vector.broadcast %187 : f32 to vector<8x128xf32>
    %189 = arith.mulf %75, %188 : vector<8x128xf32>
    %190 = arith.addf %186, %189 : vector<8x128xf32>
    %c46 = arith.constant 46 : index
    %191 = memref.load %arg1[%c46] : memref<160xf32, #tpu.memory_space<smem>>
    %192 = vector.broadcast %191 : f32 to vector<8x128xf32>
    %193 = arith.mulf %87, %192 : vector<8x128xf32>
    %194 = arith.addf %190, %193 : vector<8x128xf32>
    %c47 = arith.constant 47 : index
    %195 = memref.load %arg1[%c47] : memref<160xf32, #tpu.memory_space<smem>>
    %196 = vector.broadcast %195 : f32 to vector<8x128xf32>
    %197 = arith.mulf %99, %196 : vector<8x128xf32>
    %198 = arith.addf %194, %197 : vector<8x128xf32>
    %c48 = arith.constant 48 : index
    %199 = memref.load %arg1[%c48] : memref<160xf32, #tpu.memory_space<smem>>
    %200 = vector.broadcast %199 : f32 to vector<8x128xf32>
    %201 = arith.mulf %111, %200 : vector<8x128xf32>
    %202 = arith.addf %198, %201 : vector<8x128xf32>
    %c49 = arith.constant 49 : index
    %203 = memref.load %arg1[%c49] : memref<160xf32, #tpu.memory_space<smem>>
    %204 = vector.broadcast %203 : f32 to vector<8x128xf32>
    %205 = arith.mulf %123, %204 : vector<8x128xf32>
    %206 = arith.addf %202, %205 : vector<8x128xf32>
    %c131 = arith.constant 131 : index
    %207 = memref.load %arg1[%c131] : memref<160xf32, #tpu.memory_space<smem>>
    %208 = vector.broadcast %207 : f32 to vector<8x128xf32>
    %209 = arith.addf %206, %208 : vector<8x128xf32>
    %cst_16 = arith.constant 0.000000e+00 : f32
    %210 = vector.broadcast %cst_16 : f32 to vector<8x128xf32>
    %211 = arith.maximumf %209, %210 : vector<8x128xf32>
    %c50 = arith.constant 50 : index
    %212 = memref.load %arg1[%c50] : memref<160xf32, #tpu.memory_space<smem>>
    %213 = vector.broadcast %212 : f32 to vector<8x128xf32>
    %214 = arith.mulf %15, %213 : vector<8x128xf32>
    %c51 = arith.constant 51 : index
    %215 = memref.load %arg1[%c51] : memref<160xf32, #tpu.memory_space<smem>>
    %216 = vector.broadcast %215 : f32 to vector<8x128xf32>
    %217 = arith.mulf %27, %216 : vector<8x128xf32>
    %218 = arith.addf %214, %217 : vector<8x128xf32>
    %c52 = arith.constant 52 : index
    %219 = memref.load %arg1[%c52] : memref<160xf32, #tpu.memory_space<smem>>
    %220 = vector.broadcast %219 : f32 to vector<8x128xf32>
    %221 = arith.mulf %39, %220 : vector<8x128xf32>
    %222 = arith.addf %218, %221 : vector<8x128xf32>
    %c53 = arith.constant 53 : index
    %223 = memref.load %arg1[%c53] : memref<160xf32, #tpu.memory_space<smem>>
    %224 = vector.broadcast %223 : f32 to vector<8x128xf32>
    %225 = arith.mulf %51, %224 : vector<8x128xf32>
    %226 = arith.addf %222, %225 : vector<8x128xf32>
    %c54 = arith.constant 54 : index
    %227 = memref.load %arg1[%c54] : memref<160xf32, #tpu.memory_space<smem>>
    %228 = vector.broadcast %227 : f32 to vector<8x128xf32>
    %229 = arith.mulf %63, %228 : vector<8x128xf32>
    %230 = arith.addf %226, %229 : vector<8x128xf32>
    %c55 = arith.constant 55 : index
    %231 = memref.load %arg1[%c55] : memref<160xf32, #tpu.memory_space<smem>>
    %232 = vector.broadcast %231 : f32 to vector<8x128xf32>
    %233 = arith.mulf %75, %232 : vector<8x128xf32>
    %234 = arith.addf %230, %233 : vector<8x128xf32>
    %c56 = arith.constant 56 : index
    %235 = memref.load %arg1[%c56] : memref<160xf32, #tpu.memory_space<smem>>
    %236 = vector.broadcast %235 : f32 to vector<8x128xf32>
    %237 = arith.mulf %87, %236 : vector<8x128xf32>
    %238 = arith.addf %234, %237 : vector<8x128xf32>
    %c57 = arith.constant 57 : index
    %239 = memref.load %arg1[%c57] : memref<160xf32, #tpu.memory_space<smem>>
    %240 = vector.broadcast %239 : f32 to vector<8x128xf32>
    %241 = arith.mulf %99, %240 : vector<8x128xf32>
    %242 = arith.addf %238, %241 : vector<8x128xf32>
    %c58 = arith.constant 58 : index
    %243 = memref.load %arg1[%c58] : memref<160xf32, #tpu.memory_space<smem>>
    %244 = vector.broadcast %243 : f32 to vector<8x128xf32>
    %245 = arith.mulf %111, %244 : vector<8x128xf32>
    %246 = arith.addf %242, %245 : vector<8x128xf32>
    %c59 = arith.constant 59 : index
    %247 = memref.load %arg1[%c59] : memref<160xf32, #tpu.memory_space<smem>>
    %248 = vector.broadcast %247 : f32 to vector<8x128xf32>
    %249 = arith.mulf %123, %248 : vector<8x128xf32>
    %250 = arith.addf %246, %249 : vector<8x128xf32>
    %c132 = arith.constant 132 : index
    %251 = memref.load %arg1[%c132] : memref<160xf32, #tpu.memory_space<smem>>
    %252 = vector.broadcast %251 : f32 to vector<8x128xf32>
    %253 = arith.addf %250, %252 : vector<8x128xf32>
    %cst_17 = arith.constant 0.000000e+00 : f32
    %254 = vector.broadcast %cst_17 : f32 to vector<8x128xf32>
    %255 = arith.maximumf %253, %254 : vector<8x128xf32>
    %c60 = arith.constant 60 : index
    %256 = memref.load %arg1[%c60] : memref<160xf32, #tpu.memory_space<smem>>
    %257 = vector.broadcast %256 : f32 to vector<8x128xf32>
    %258 = arith.mulf %15, %257 : vector<8x128xf32>
    %c61 = arith.constant 61 : index
    %259 = memref.load %arg1[%c61] : memref<160xf32, #tpu.memory_space<smem>>
    %260 = vector.broadcast %259 : f32 to vector<8x128xf32>
    %261 = arith.mulf %27, %260 : vector<8x128xf32>
    %262 = arith.addf %258, %261 : vector<8x128xf32>
    %c62 = arith.constant 62 : index
    %263 = memref.load %arg1[%c62] : memref<160xf32, #tpu.memory_space<smem>>
    %264 = vector.broadcast %263 : f32 to vector<8x128xf32>
    %265 = arith.mulf %39, %264 : vector<8x128xf32>
    %266 = arith.addf %262, %265 : vector<8x128xf32>
    %c63 = arith.constant 63 : index
    %267 = memref.load %arg1[%c63] : memref<160xf32, #tpu.memory_space<smem>>
    %268 = vector.broadcast %267 : f32 to vector<8x128xf32>
    %269 = arith.mulf %51, %268 : vector<8x128xf32>
    %270 = arith.addf %266, %269 : vector<8x128xf32>
    %c64 = arith.constant 64 : index
    %271 = memref.load %arg1[%c64] : memref<160xf32, #tpu.memory_space<smem>>
    %272 = vector.broadcast %271 : f32 to vector<8x128xf32>
    %273 = arith.mulf %63, %272 : vector<8x128xf32>
    %274 = arith.addf %270, %273 : vector<8x128xf32>
    %c65 = arith.constant 65 : index
    %275 = memref.load %arg1[%c65] : memref<160xf32, #tpu.memory_space<smem>>
    %276 = vector.broadcast %275 : f32 to vector<8x128xf32>
    %277 = arith.mulf %75, %276 : vector<8x128xf32>
    %278 = arith.addf %274, %277 : vector<8x128xf32>
    %c66 = arith.constant 66 : index
    %279 = memref.load %arg1[%c66] : memref<160xf32, #tpu.memory_space<smem>>
    %280 = vector.broadcast %279 : f32 to vector<8x128xf32>
    %281 = arith.mulf %87, %280 : vector<8x128xf32>
    %282 = arith.addf %278, %281 : vector<8x128xf32>
    %c67 = arith.constant 67 : index
    %283 = memref.load %arg1[%c67] : memref<160xf32, #tpu.memory_space<smem>>
    %284 = vector.broadcast %283 : f32 to vector<8x128xf32>
    %285 = arith.mulf %99, %284 : vector<8x128xf32>
    %286 = arith.addf %282, %285 : vector<8x128xf32>
    %c68 = arith.constant 68 : index
    %287 = memref.load %arg1[%c68] : memref<160xf32, #tpu.memory_space<smem>>
    %288 = vector.broadcast %287 : f32 to vector<8x128xf32>
    %289 = arith.mulf %111, %288 : vector<8x128xf32>
    %290 = arith.addf %286, %289 : vector<8x128xf32>
    %c69 = arith.constant 69 : index
    %291 = memref.load %arg1[%c69] : memref<160xf32, #tpu.memory_space<smem>>
    %292 = vector.broadcast %291 : f32 to vector<8x128xf32>
    %293 = arith.mulf %123, %292 : vector<8x128xf32>
    %294 = arith.addf %290, %293 : vector<8x128xf32>
    %c133 = arith.constant 133 : index
    %295 = memref.load %arg1[%c133] : memref<160xf32, #tpu.memory_space<smem>>
    %296 = vector.broadcast %295 : f32 to vector<8x128xf32>
    %297 = arith.addf %294, %296 : vector<8x128xf32>
    %cst_18 = arith.constant 0.000000e+00 : f32
    %298 = vector.broadcast %cst_18 : f32 to vector<8x128xf32>
    %299 = arith.maximumf %297, %298 : vector<8x128xf32>
    %c70 = arith.constant 70 : index
    %300 = memref.load %arg1[%c70] : memref<160xf32, #tpu.memory_space<smem>>
    %301 = vector.broadcast %300 : f32 to vector<8x128xf32>
    %302 = arith.mulf %15, %301 : vector<8x128xf32>
    %c71 = arith.constant 71 : index
    %303 = memref.load %arg1[%c71] : memref<160xf32, #tpu.memory_space<smem>>
    %304 = vector.broadcast %303 : f32 to vector<8x128xf32>
    %305 = arith.mulf %27, %304 : vector<8x128xf32>
    %306 = arith.addf %302, %305 : vector<8x128xf32>
    %c72 = arith.constant 72 : index
    %307 = memref.load %arg1[%c72] : memref<160xf32, #tpu.memory_space<smem>>
    %308 = vector.broadcast %307 : f32 to vector<8x128xf32>
    %309 = arith.mulf %39, %308 : vector<8x128xf32>
    %310 = arith.addf %306, %309 : vector<8x128xf32>
    %c73 = arith.constant 73 : index
    %311 = memref.load %arg1[%c73] : memref<160xf32, #tpu.memory_space<smem>>
    %312 = vector.broadcast %311 : f32 to vector<8x128xf32>
    %313 = arith.mulf %51, %312 : vector<8x128xf32>
    %314 = arith.addf %310, %313 : vector<8x128xf32>
    %c74 = arith.constant 74 : index
    %315 = memref.load %arg1[%c74] : memref<160xf32, #tpu.memory_space<smem>>
    %316 = vector.broadcast %315 : f32 to vector<8x128xf32>
    %317 = arith.mulf %63, %316 : vector<8x128xf32>
    %318 = arith.addf %314, %317 : vector<8x128xf32>
    %c75 = arith.constant 75 : index
    %319 = memref.load %arg1[%c75] : memref<160xf32, #tpu.memory_space<smem>>
    %320 = vector.broadcast %319 : f32 to vector<8x128xf32>
    %321 = arith.mulf %75, %320 : vector<8x128xf32>
    %322 = arith.addf %318, %321 : vector<8x128xf32>
    %c76 = arith.constant 76 : index
    %323 = memref.load %arg1[%c76] : memref<160xf32, #tpu.memory_space<smem>>
    %324 = vector.broadcast %323 : f32 to vector<8x128xf32>
    %325 = arith.mulf %87, %324 : vector<8x128xf32>
    %326 = arith.addf %322, %325 : vector<8x128xf32>
    %c77 = arith.constant 77 : index
    %327 = memref.load %arg1[%c77] : memref<160xf32, #tpu.memory_space<smem>>
    %328 = vector.broadcast %327 : f32 to vector<8x128xf32>
    %329 = arith.mulf %99, %328 : vector<8x128xf32>
    %330 = arith.addf %326, %329 : vector<8x128xf32>
    %c78 = arith.constant 78 : index
    %331 = memref.load %arg1[%c78] : memref<160xf32, #tpu.memory_space<smem>>
    %332 = vector.broadcast %331 : f32 to vector<8x128xf32>
    %333 = arith.mulf %111, %332 : vector<8x128xf32>
    %334 = arith.addf %330, %333 : vector<8x128xf32>
    %c79 = arith.constant 79 : index
    %335 = memref.load %arg1[%c79] : memref<160xf32, #tpu.memory_space<smem>>
    %336 = vector.broadcast %335 : f32 to vector<8x128xf32>
    %337 = arith.mulf %123, %336 : vector<8x128xf32>
    %338 = arith.addf %334, %337 : vector<8x128xf32>
    %c134 = arith.constant 134 : index
    %339 = memref.load %arg1[%c134] : memref<160xf32, #tpu.memory_space<smem>>
    %340 = vector.broadcast %339 : f32 to vector<8x128xf32>
    %341 = arith.addf %338, %340 : vector<8x128xf32>
    %cst_19 = arith.constant 0.000000e+00 : f32
    %342 = vector.broadcast %cst_19 : f32 to vector<8x128xf32>
    %343 = arith.maximumf %341, %342 : vector<8x128xf32>
    %c80 = arith.constant 80 : index
    %344 = memref.load %arg1[%c80] : memref<160xf32, #tpu.memory_space<smem>>
    %345 = vector.broadcast %344 : f32 to vector<8x128xf32>
    %346 = arith.mulf %15, %345 : vector<8x128xf32>
    %c81 = arith.constant 81 : index
    %347 = memref.load %arg1[%c81] : memref<160xf32, #tpu.memory_space<smem>>
    %348 = vector.broadcast %347 : f32 to vector<8x128xf32>
    %349 = arith.mulf %27, %348 : vector<8x128xf32>
    %350 = arith.addf %346, %349 : vector<8x128xf32>
    %c82 = arith.constant 82 : index
    %351 = memref.load %arg1[%c82] : memref<160xf32, #tpu.memory_space<smem>>
    %352 = vector.broadcast %351 : f32 to vector<8x128xf32>
    %353 = arith.mulf %39, %352 : vector<8x128xf32>
    %354 = arith.addf %350, %353 : vector<8x128xf32>
    %c83 = arith.constant 83 : index
    %355 = memref.load %arg1[%c83] : memref<160xf32, #tpu.memory_space<smem>>
    %356 = vector.broadcast %355 : f32 to vector<8x128xf32>
    %357 = arith.mulf %51, %356 : vector<8x128xf32>
    %358 = arith.addf %354, %357 : vector<8x128xf32>
    %c84 = arith.constant 84 : index
    %359 = memref.load %arg1[%c84] : memref<160xf32, #tpu.memory_space<smem>>
    %360 = vector.broadcast %359 : f32 to vector<8x128xf32>
    %361 = arith.mulf %63, %360 : vector<8x128xf32>
    %362 = arith.addf %358, %361 : vector<8x128xf32>
    %c85 = arith.constant 85 : index
    %363 = memref.load %arg1[%c85] : memref<160xf32, #tpu.memory_space<smem>>
    %364 = vector.broadcast %363 : f32 to vector<8x128xf32>
    %365 = arith.mulf %75, %364 : vector<8x128xf32>
    %366 = arith.addf %362, %365 : vector<8x128xf32>
    %c86 = arith.constant 86 : index
    %367 = memref.load %arg1[%c86] : memref<160xf32, #tpu.memory_space<smem>>
    %368 = vector.broadcast %367 : f32 to vector<8x128xf32>
    %369 = arith.mulf %87, %368 : vector<8x128xf32>
    %370 = arith.addf %366, %369 : vector<8x128xf32>
    %c87 = arith.constant 87 : index
    %371 = memref.load %arg1[%c87] : memref<160xf32, #tpu.memory_space<smem>>
    %372 = vector.broadcast %371 : f32 to vector<8x128xf32>
    %373 = arith.mulf %99, %372 : vector<8x128xf32>
    %374 = arith.addf %370, %373 : vector<8x128xf32>
    %c88 = arith.constant 88 : index
    %375 = memref.load %arg1[%c88] : memref<160xf32, #tpu.memory_space<smem>>
    %376 = vector.broadcast %375 : f32 to vector<8x128xf32>
    %377 = arith.mulf %111, %376 : vector<8x128xf32>
    %378 = arith.addf %374, %377 : vector<8x128xf32>
    %c89 = arith.constant 89 : index
    %379 = memref.load %arg1[%c89] : memref<160xf32, #tpu.memory_space<smem>>
    %380 = vector.broadcast %379 : f32 to vector<8x128xf32>
    %381 = arith.mulf %123, %380 : vector<8x128xf32>
    %382 = arith.addf %378, %381 : vector<8x128xf32>
    %c135 = arith.constant 135 : index
    %383 = memref.load %arg1[%c135] : memref<160xf32, #tpu.memory_space<smem>>
    %384 = vector.broadcast %383 : f32 to vector<8x128xf32>
    %385 = arith.addf %382, %384 : vector<8x128xf32>
    %cst_20 = arith.constant 0.000000e+00 : f32
    %386 = vector.broadcast %cst_20 : f32 to vector<8x128xf32>
    %387 = arith.maximumf %385, %386 : vector<8x128xf32>
    %c90 = arith.constant 90 : index
    %388 = memref.load %arg1[%c90] : memref<160xf32, #tpu.memory_space<smem>>
    %389 = vector.broadcast %388 : f32 to vector<8x128xf32>
    %390 = arith.mulf %15, %389 : vector<8x128xf32>
    %c91 = arith.constant 91 : index
    %391 = memref.load %arg1[%c91] : memref<160xf32, #tpu.memory_space<smem>>
    %392 = vector.broadcast %391 : f32 to vector<8x128xf32>
    %393 = arith.mulf %27, %392 : vector<8x128xf32>
    %394 = arith.addf %390, %393 : vector<8x128xf32>
    %c92 = arith.constant 92 : index
    %395 = memref.load %arg1[%c92] : memref<160xf32, #tpu.memory_space<smem>>
    %396 = vector.broadcast %395 : f32 to vector<8x128xf32>
    %397 = arith.mulf %39, %396 : vector<8x128xf32>
    %398 = arith.addf %394, %397 : vector<8x128xf32>
    %c93 = arith.constant 93 : index
    %399 = memref.load %arg1[%c93] : memref<160xf32, #tpu.memory_space<smem>>
    %400 = vector.broadcast %399 : f32 to vector<8x128xf32>
    %401 = arith.mulf %51, %400 : vector<8x128xf32>
    %402 = arith.addf %398, %401 : vector<8x128xf32>
    %c94 = arith.constant 94 : index
    %403 = memref.load %arg1[%c94] : memref<160xf32, #tpu.memory_space<smem>>
    %404 = vector.broadcast %403 : f32 to vector<8x128xf32>
    %405 = arith.mulf %63, %404 : vector<8x128xf32>
    %406 = arith.addf %402, %405 : vector<8x128xf32>
    %c95 = arith.constant 95 : index
    %407 = memref.load %arg1[%c95] : memref<160xf32, #tpu.memory_space<smem>>
    %408 = vector.broadcast %407 : f32 to vector<8x128xf32>
    %409 = arith.mulf %75, %408 : vector<8x128xf32>
    %410 = arith.addf %406, %409 : vector<8x128xf32>
    %c96 = arith.constant 96 : index
    %411 = memref.load %arg1[%c96] : memref<160xf32, #tpu.memory_space<smem>>
    %412 = vector.broadcast %411 : f32 to vector<8x128xf32>
    %413 = arith.mulf %87, %412 : vector<8x128xf32>
    %414 = arith.addf %410, %413 : vector<8x128xf32>
    %c97 = arith.constant 97 : index
    %415 = memref.load %arg1[%c97] : memref<160xf32, #tpu.memory_space<smem>>
    %416 = vector.broadcast %415 : f32 to vector<8x128xf32>
    %417 = arith.mulf %99, %416 : vector<8x128xf32>
    %418 = arith.addf %414, %417 : vector<8x128xf32>
    %c98 = arith.constant 98 : index
    %419 = memref.load %arg1[%c98] : memref<160xf32, #tpu.memory_space<smem>>
    %420 = vector.broadcast %419 : f32 to vector<8x128xf32>
    %421 = arith.mulf %111, %420 : vector<8x128xf32>
    %422 = arith.addf %418, %421 : vector<8x128xf32>
    %c99 = arith.constant 99 : index
    %423 = memref.load %arg1[%c99] : memref<160xf32, #tpu.memory_space<smem>>
    %424 = vector.broadcast %423 : f32 to vector<8x128xf32>
    %425 = arith.mulf %123, %424 : vector<8x128xf32>
    %426 = arith.addf %422, %425 : vector<8x128xf32>
    %c136 = arith.constant 136 : index
    %427 = memref.load %arg1[%c136] : memref<160xf32, #tpu.memory_space<smem>>
    %428 = vector.broadcast %427 : f32 to vector<8x128xf32>
    %429 = arith.addf %426, %428 : vector<8x128xf32>
    %cst_21 = arith.constant 0.000000e+00 : f32
    %430 = vector.broadcast %cst_21 : f32 to vector<8x128xf32>
    %431 = arith.maximumf %429, %430 : vector<8x128xf32>
    %c100 = arith.constant 100 : index
    %432 = memref.load %arg1[%c100] : memref<160xf32, #tpu.memory_space<smem>>
    %433 = vector.broadcast %432 : f32 to vector<8x128xf32>
    %434 = arith.mulf %15, %433 : vector<8x128xf32>
    %c101 = arith.constant 101 : index
    %435 = memref.load %arg1[%c101] : memref<160xf32, #tpu.memory_space<smem>>
    %436 = vector.broadcast %435 : f32 to vector<8x128xf32>
    %437 = arith.mulf %27, %436 : vector<8x128xf32>
    %438 = arith.addf %434, %437 : vector<8x128xf32>
    %c102 = arith.constant 102 : index
    %439 = memref.load %arg1[%c102] : memref<160xf32, #tpu.memory_space<smem>>
    %440 = vector.broadcast %439 : f32 to vector<8x128xf32>
    %441 = arith.mulf %39, %440 : vector<8x128xf32>
    %442 = arith.addf %438, %441 : vector<8x128xf32>
    %c103 = arith.constant 103 : index
    %443 = memref.load %arg1[%c103] : memref<160xf32, #tpu.memory_space<smem>>
    %444 = vector.broadcast %443 : f32 to vector<8x128xf32>
    %445 = arith.mulf %51, %444 : vector<8x128xf32>
    %446 = arith.addf %442, %445 : vector<8x128xf32>
    %c104 = arith.constant 104 : index
    %447 = memref.load %arg1[%c104] : memref<160xf32, #tpu.memory_space<smem>>
    %448 = vector.broadcast %447 : f32 to vector<8x128xf32>
    %449 = arith.mulf %63, %448 : vector<8x128xf32>
    %450 = arith.addf %446, %449 : vector<8x128xf32>
    %c105 = arith.constant 105 : index
    %451 = memref.load %arg1[%c105] : memref<160xf32, #tpu.memory_space<smem>>
    %452 = vector.broadcast %451 : f32 to vector<8x128xf32>
    %453 = arith.mulf %75, %452 : vector<8x128xf32>
    %454 = arith.addf %450, %453 : vector<8x128xf32>
    %c106 = arith.constant 106 : index
    %455 = memref.load %arg1[%c106] : memref<160xf32, #tpu.memory_space<smem>>
    %456 = vector.broadcast %455 : f32 to vector<8x128xf32>
    %457 = arith.mulf %87, %456 : vector<8x128xf32>
    %458 = arith.addf %454, %457 : vector<8x128xf32>
    %c107 = arith.constant 107 : index
    %459 = memref.load %arg1[%c107] : memref<160xf32, #tpu.memory_space<smem>>
    %460 = vector.broadcast %459 : f32 to vector<8x128xf32>
    %461 = arith.mulf %99, %460 : vector<8x128xf32>
    %462 = arith.addf %458, %461 : vector<8x128xf32>
    %c108 = arith.constant 108 : index
    %463 = memref.load %arg1[%c108] : memref<160xf32, #tpu.memory_space<smem>>
    %464 = vector.broadcast %463 : f32 to vector<8x128xf32>
    %465 = arith.mulf %111, %464 : vector<8x128xf32>
    %466 = arith.addf %462, %465 : vector<8x128xf32>
    %c109 = arith.constant 109 : index
    %467 = memref.load %arg1[%c109] : memref<160xf32, #tpu.memory_space<smem>>
    %468 = vector.broadcast %467 : f32 to vector<8x128xf32>
    %469 = arith.mulf %123, %468 : vector<8x128xf32>
    %470 = arith.addf %466, %469 : vector<8x128xf32>
    %c137 = arith.constant 137 : index
    %471 = memref.load %arg1[%c137] : memref<160xf32, #tpu.memory_space<smem>>
    %472 = vector.broadcast %471 : f32 to vector<8x128xf32>
    %473 = arith.addf %470, %472 : vector<8x128xf32>
    %cst_22 = arith.constant 0.000000e+00 : f32
    %474 = vector.broadcast %cst_22 : f32 to vector<8x128xf32>
    %475 = arith.maximumf %473, %474 : vector<8x128xf32>
    %c110 = arith.constant 110 : index
    %476 = memref.load %arg1[%c110] : memref<160xf32, #tpu.memory_space<smem>>
    %477 = vector.broadcast %476 : f32 to vector<8x128xf32>
    %478 = arith.mulf %15, %477 : vector<8x128xf32>
    %c111 = arith.constant 111 : index
    %479 = memref.load %arg1[%c111] : memref<160xf32, #tpu.memory_space<smem>>
    %480 = vector.broadcast %479 : f32 to vector<8x128xf32>
    %481 = arith.mulf %27, %480 : vector<8x128xf32>
    %482 = arith.addf %478, %481 : vector<8x128xf32>
    %c112 = arith.constant 112 : index
    %483 = memref.load %arg1[%c112] : memref<160xf32, #tpu.memory_space<smem>>
    %484 = vector.broadcast %483 : f32 to vector<8x128xf32>
    %485 = arith.mulf %39, %484 : vector<8x128xf32>
    %486 = arith.addf %482, %485 : vector<8x128xf32>
    %c113 = arith.constant 113 : index
    %487 = memref.load %arg1[%c113] : memref<160xf32, #tpu.memory_space<smem>>
    %488 = vector.broadcast %487 : f32 to vector<8x128xf32>
    %489 = arith.mulf %51, %488 : vector<8x128xf32>
    %490 = arith.addf %486, %489 : vector<8x128xf32>
    %c114 = arith.constant 114 : index
    %491 = memref.load %arg1[%c114] : memref<160xf32, #tpu.memory_space<smem>>
    %492 = vector.broadcast %491 : f32 to vector<8x128xf32>
    %493 = arith.mulf %63, %492 : vector<8x128xf32>
    %494 = arith.addf %490, %493 : vector<8x128xf32>
    %c115 = arith.constant 115 : index
    %495 = memref.load %arg1[%c115] : memref<160xf32, #tpu.memory_space<smem>>
    %496 = vector.broadcast %495 : f32 to vector<8x128xf32>
    %497 = arith.mulf %75, %496 : vector<8x128xf32>
    %498 = arith.addf %494, %497 : vector<8x128xf32>
    %c116 = arith.constant 116 : index
    %499 = memref.load %arg1[%c116] : memref<160xf32, #tpu.memory_space<smem>>
    %500 = vector.broadcast %499 : f32 to vector<8x128xf32>
    %501 = arith.mulf %87, %500 : vector<8x128xf32>
    %502 = arith.addf %498, %501 : vector<8x128xf32>
    %c117 = arith.constant 117 : index
    %503 = memref.load %arg1[%c117] : memref<160xf32, #tpu.memory_space<smem>>
    %504 = vector.broadcast %503 : f32 to vector<8x128xf32>
    %505 = arith.mulf %99, %504 : vector<8x128xf32>
    %506 = arith.addf %502, %505 : vector<8x128xf32>
    %c118 = arith.constant 118 : index
    %507 = memref.load %arg1[%c118] : memref<160xf32, #tpu.memory_space<smem>>
    %508 = vector.broadcast %507 : f32 to vector<8x128xf32>
    %509 = arith.mulf %111, %508 : vector<8x128xf32>
    %510 = arith.addf %506, %509 : vector<8x128xf32>
    %c119 = arith.constant 119 : index
    %511 = memref.load %arg1[%c119] : memref<160xf32, #tpu.memory_space<smem>>
    %512 = vector.broadcast %511 : f32 to vector<8x128xf32>
    %513 = arith.mulf %123, %512 : vector<8x128xf32>
    %514 = arith.addf %510, %513 : vector<8x128xf32>
    %c138 = arith.constant 138 : index
    %515 = memref.load %arg1[%c138] : memref<160xf32, #tpu.memory_space<smem>>
    %516 = vector.broadcast %515 : f32 to vector<8x128xf32>
    %517 = arith.addf %514, %516 : vector<8x128xf32>
    %cst_23 = arith.constant 0.000000e+00 : f32
    %518 = vector.broadcast %cst_23 : f32 to vector<8x128xf32>
    %519 = arith.maximumf %517, %518 : vector<8x128xf32>
    %c120 = arith.constant 120 : index
    %520 = memref.load %arg1[%c120] : memref<160xf32, #tpu.memory_space<smem>>
    %521 = vector.broadcast %520 : f32 to vector<8x128xf32>
    %522 = arith.mulf %15, %521 : vector<8x128xf32>
    %c121 = arith.constant 121 : index
    %523 = memref.load %arg1[%c121] : memref<160xf32, #tpu.memory_space<smem>>
    %524 = vector.broadcast %523 : f32 to vector<8x128xf32>
    %525 = arith.mulf %27, %524 : vector<8x128xf32>
    %526 = arith.addf %522, %525 : vector<8x128xf32>
    %c122 = arith.constant 122 : index
    %527 = memref.load %arg1[%c122] : memref<160xf32, #tpu.memory_space<smem>>
    %528 = vector.broadcast %527 : f32 to vector<8x128xf32>
    %529 = arith.mulf %39, %528 : vector<8x128xf32>
    %530 = arith.addf %526, %529 : vector<8x128xf32>
    %c123 = arith.constant 123 : index
    %531 = memref.load %arg1[%c123] : memref<160xf32, #tpu.memory_space<smem>>
    %532 = vector.broadcast %531 : f32 to vector<8x128xf32>
    %533 = arith.mulf %51, %532 : vector<8x128xf32>
    %534 = arith.addf %530, %533 : vector<8x128xf32>
    %c124 = arith.constant 124 : index
    %535 = memref.load %arg1[%c124] : memref<160xf32, #tpu.memory_space<smem>>
    %536 = vector.broadcast %535 : f32 to vector<8x128xf32>
    %537 = arith.mulf %63, %536 : vector<8x128xf32>
    %538 = arith.addf %534, %537 : vector<8x128xf32>
    %c125 = arith.constant 125 : index
    %539 = memref.load %arg1[%c125] : memref<160xf32, #tpu.memory_space<smem>>
    %540 = vector.broadcast %539 : f32 to vector<8x128xf32>
    %541 = arith.mulf %75, %540 : vector<8x128xf32>
    %542 = arith.addf %538, %541 : vector<8x128xf32>
    %c126 = arith.constant 126 : index
    %543 = memref.load %arg1[%c126] : memref<160xf32, #tpu.memory_space<smem>>
    %544 = vector.broadcast %543 : f32 to vector<8x128xf32>
    %545 = arith.mulf %87, %544 : vector<8x128xf32>
    %546 = arith.addf %542, %545 : vector<8x128xf32>
    %c127 = arith.constant 127 : index
    %547 = memref.load %arg1[%c127] : memref<160xf32, #tpu.memory_space<smem>>
    %548 = vector.broadcast %547 : f32 to vector<8x128xf32>
    %549 = arith.mulf %99, %548 : vector<8x128xf32>
    %550 = arith.addf %546, %549 : vector<8x128xf32>
    %c128 = arith.constant 128 : index
    %551 = memref.load %arg1[%c128] : memref<160xf32, #tpu.memory_space<smem>>
    %552 = vector.broadcast %551 : f32 to vector<8x128xf32>
    %553 = arith.mulf %111, %552 : vector<8x128xf32>
    %554 = arith.addf %550, %553 : vector<8x128xf32>
    %c129 = arith.constant 129 : index
    %555 = memref.load %arg1[%c129] : memref<160xf32, #tpu.memory_space<smem>>
    %556 = vector.broadcast %555 : f32 to vector<8x128xf32>
    %557 = arith.mulf %123, %556 : vector<8x128xf32>
    %558 = arith.addf %554, %557 : vector<8x128xf32>
    %c139 = arith.constant 139 : index
    %559 = memref.load %arg1[%c139] : memref<160xf32, #tpu.memory_space<smem>>
    %560 = vector.broadcast %559 : f32 to vector<8x128xf32>
    %561 = arith.addf %558, %560 : vector<8x128xf32>
    %cst_24 = arith.constant 0.000000e+00 : f32
    %562 = vector.broadcast %cst_24 : f32 to vector<8x128xf32>
    %563 = arith.maximumf %561, %562 : vector<8x128xf32>
    %c140 = arith.constant 140 : index
    %564 = memref.load %arg1[%c140] : memref<160xf32, #tpu.memory_space<smem>>
    %565 = vector.broadcast %564 : f32 to vector<8x128xf32>
    %566 = arith.mulf %167, %565 : vector<8x128xf32>
    %c141 = arith.constant 141 : index
    %567 = memref.load %arg1[%c141] : memref<160xf32, #tpu.memory_space<smem>>
    %568 = vector.broadcast %567 : f32 to vector<8x128xf32>
    %569 = arith.mulf %211, %568 : vector<8x128xf32>
    %570 = arith.addf %566, %569 : vector<8x128xf32>
    %c142 = arith.constant 142 : index
    %571 = memref.load %arg1[%c142] : memref<160xf32, #tpu.memory_space<smem>>
    %572 = vector.broadcast %571 : f32 to vector<8x128xf32>
    %573 = arith.mulf %255, %572 : vector<8x128xf32>
    %574 = arith.addf %570, %573 : vector<8x128xf32>
    %c143 = arith.constant 143 : index
    %575 = memref.load %arg1[%c143] : memref<160xf32, #tpu.memory_space<smem>>
    %576 = vector.broadcast %575 : f32 to vector<8x128xf32>
    %577 = arith.mulf %299, %576 : vector<8x128xf32>
    %578 = arith.addf %574, %577 : vector<8x128xf32>
    %c144 = arith.constant 144 : index
    %579 = memref.load %arg1[%c144] : memref<160xf32, #tpu.memory_space<smem>>
    %580 = vector.broadcast %579 : f32 to vector<8x128xf32>
    %581 = arith.mulf %343, %580 : vector<8x128xf32>
    %582 = arith.addf %578, %581 : vector<8x128xf32>
    %c145 = arith.constant 145 : index
    %583 = memref.load %arg1[%c145] : memref<160xf32, #tpu.memory_space<smem>>
    %584 = vector.broadcast %583 : f32 to vector<8x128xf32>
    %585 = arith.mulf %387, %584 : vector<8x128xf32>
    %586 = arith.addf %582, %585 : vector<8x128xf32>
    %c146 = arith.constant 146 : index
    %587 = memref.load %arg1[%c146] : memref<160xf32, #tpu.memory_space<smem>>
    %588 = vector.broadcast %587 : f32 to vector<8x128xf32>
    %589 = arith.mulf %431, %588 : vector<8x128xf32>
    %590 = arith.addf %586, %589 : vector<8x128xf32>
    %c147 = arith.constant 147 : index
    %591 = memref.load %arg1[%c147] : memref<160xf32, #tpu.memory_space<smem>>
    %592 = vector.broadcast %591 : f32 to vector<8x128xf32>
    %593 = arith.mulf %475, %592 : vector<8x128xf32>
    %594 = arith.addf %590, %593 : vector<8x128xf32>
    %c148 = arith.constant 148 : index
    %595 = memref.load %arg1[%c148] : memref<160xf32, #tpu.memory_space<smem>>
    %596 = vector.broadcast %595 : f32 to vector<8x128xf32>
    %597 = arith.mulf %519, %596 : vector<8x128xf32>
    %598 = arith.addf %594, %597 : vector<8x128xf32>
    %c149 = arith.constant 149 : index
    %599 = memref.load %arg1[%c149] : memref<160xf32, #tpu.memory_space<smem>>
    %600 = vector.broadcast %599 : f32 to vector<8x128xf32>
    %601 = arith.mulf %563, %600 : vector<8x128xf32>
    %602 = arith.addf %598, %601 : vector<8x128xf32>
    %c150 = arith.constant 150 : index
    %603 = memref.load %arg1[%c150] : memref<160xf32, #tpu.memory_space<smem>>
    %604 = vector.broadcast %603 : f32 to vector<8x128xf32>
    %605 = arith.addf %602, %604 : vector<8x128xf32>
    %c0_25 = arith.constant 0 : index
    %c0_26 = arith.constant 0 : index
    %606 = vector.load %arg3[%c0_25, %c0_26] : memref<8x128xf32, #tpu.memory_space<vmem>>, vector<8x128xf32>
    tpu.vector_store %arg3[%c0_25, %c0_26], %605 {strides = array<i32>} : memref<8x128xf32, #tpu.memory_space<vmem>>, vector<8x128xf32>,
    return
  }
  func.func @transform_0(%arg0: i32) -> i32 {
    %c0_i32 = arith.constant 0 : i32
    %c0_i32_0 = arith.constant 0 : i32
    return %c0_i32 : i32
  }
  func.func @transform_1(%arg0: i32) -> (i32, i32, i32) {
    %c0_i32 = arith.constant 0 : i32
    %c0_i32_0 = arith.constant 0 : i32
    %c0_i32_1 = arith.constant 0 : i32
    return %c0_i32, %arg0, %c0_i32_0 : i32, i32, i32
  }
  func.func @transform_2(%arg0: i32) -> (i32, i32) {
    %c0_i32 = arith.constant 0 : i32
    %c0_i32_0 = arith.constant 0 : i32
    return %arg0, %c0_i32 : i32, i32
  }
}

</mosaic_0001>

<bundles_post_ra>
// kernel: tpu_custom_call.1
= control target key start
LH: loop header
LB: loop body
LE: loop exit
PB: predicated region body
PF: predicated region fallthrough
CT: control target
= control target key end

     0   :  { %s1492_s0 = inlined_call_operand.hbm [shape: f32[160], index: 0, kind: input, shape index: {}]   ;;  %s1493_s1 = inlined_call_operand.hbm [shape: f32[2,8,128], index: 1, kind: input, shape index: {}]   ;;  %s1494_s2 = inlined_call_operand.hbm [shape: f32[8,128], index: 2, kind: output, shape index: {}]  }
   0x1   :  { %1495 = sst [smem:[#allocation24_spill]] %s1494_s2 }
   0x2   :  { %7 = vsyncpa [#allocation5], 0 }
   0x3   :  { %8 = vsyncpa [#allocation3], 0 }
   0x4   :  { %9 = vsyncpa [#allocation4], 0  ;;  %s848_s9 = smov [#allocation2]   ;;  %s849_s12 = smov [#allocation6]  }
   0x5   :  { %17 = dma.hbm_to_smem %s1492_s0, 32, %s848_s9, [#allocation5]  }
   0x6   :  { %s23_s13 = sshll.u32 %s849_s12, 4  ;;  %s24_s13 = int_to_ptr.vmem [resolvable:$true] %s23_s13 }
   0x7   :  { %s810_s14 = scalar_lea.vmem %s24_s13, 256  ;;  %p815_p1 = scmp.lt.s32.totalorder %s24_s13, %s24_s13 }
   0x8   :  { %p811_p0 = scmp.ne.s32.totalorder %s24_s13, %s810_s14  ;;  %p816_p2 = scmp.lt.s32.totalorder %s810_s14, %s810_s14 }
   0xa   :  { %p817_p3 = por %p816_p2, %p815_p1 }
   0xc   :  { %p818_p4 = pnand %p817_p3, %p811_p0 }
   0xe   :  { %821 = shalt.err (!%p818_p4)
}
   0xf   :  { %s850_s15 = smov 128   ;;  %s851_s16 = smov 8  }
  0x10   :  { %29 = dma.hbm_to_vmem [thread:$0]  %s1493_s1, 256, %s24_s13, [#allocation3], %s850_s15, %s850_s15, %s851_s16  }
  0x11   :  { %842 = dma.done.wait [#allocation5], 32  }
  0x12   :  { %843 = vsyncadd [#allocation5], 4294967264 }
  0x13   :  { %844 = dma.done.wait [#allocation3], 256  }
  0x14   :  { %845 = vsyncadd [#allocation3], 4294967040 }
  0x15   :  { %36 = sfence }
  0x16   :  { %s874_s0 = sld [smem:[#allocation2]]  ;;  %v946_v0 = vld [vmem:[#allocation6] sm:$0xff]  ;;  %v948_v1 = vld [vmem:[#allocation6 + $0x8] sm:$0xff] }
  0x17   :  { %s876_s19 = sld [smem:[#allocation2 + $0x1]] }
  0x18   :  { %s878_s20 = sld [smem:[#allocation2 + $0x14]] }
  0x19   :  { %s880_s21 = sld [smem:[#allocation2 + $0x2]] }
  0x1a   :  { %s882_s22 = sld [smem:[#allocation2 + $0x3]] }
  0x1b   :  { %s884_s23 = sld [smem:[#allocation2 + $0x15]] }
  0x1c   :  { %s886_s24 = sld [smem:[#allocation2 + $0x4]]  ;;  %v41_v2 = vstv %s874_s0 }
  0x1d   :  { %s888_s1 = sld [smem:[#allocation2 + $0x5]]  ;;  %v44_v3 = vstv %s876_s19  ;;  %v42_v6 = vmul.f32 %v41_v2, %v946_v0 }
  0x1e   :  { %s890_s25 = sld [smem:[#allocation2 + $0x16]]  ;;  %v45_v7 = vmul.f32 %v44_v3, %v948_v1  ;;  %v48_v18 = vstv %s878_s20 }
  0x1f   :  { %s892_s26 = sld [smem:[#allocation2 + $0x6]]  ;;  %v52_v4 = vstv %s880_s21 }
  0x20   :  { %s894_s27 = sld [smem:[#allocation2 + $0x7]]  ;;  %v55_v5 = vstv %s882_s22  ;;  %v53_v8 = vmul.f32 %v52_v4, %v946_v0  ;;  %v46_v12 = vadd.f32 %v45_v7, %v42_v6 }
  0x21   :  { %s896_s28 = sld [smem:[#allocation2 + $0x17]]  ;;  %v56_v9 = vmul.f32 %v55_v5, %v948_v1  ;;  %v59_v19 = vstv %s884_s23 }
  0x22   :  { %s898_s29 = sld [smem:[#allocation2 + $0x8]]  ;;  %v63_v10 = vstv %s886_s24  ;;  %v49_v24 = vadd.f32 %v48_v18, %v46_v12 }
  0x23   :  { %s900_s30 = sld [smem:[#allocation2 + $0x9]]  ;;  %v66_v11 = vstv %s888_s1  ;;  %v57_v13 = vadd.f32 %v56_v9, %v53_v8  ;;  %v64_v14 = vmul.f32 %v63_v10, %v946_v0 }
  0x24   :  { %s902_s3 = sld [smem:[#allocation2 + $0x18]]  ;;  %v67_v15 = vmul.f32 %v66_v11, %v948_v1  ;;  %v70_v27 = vstv %s890_s25  ;;  %v1007_v33 = vmax.f32 %v49_v24, 0.0 }
  0x25   :  { %s904_s4 = sld [smem:[#allocation2 + $0xa]]  ;;  %v74_v16 = vstv %s892_s26  ;;  %v60_v25 = vadd.f32 %v59_v19, %v57_v13 }
  0x26   :  { %s906_s5 = sld [smem:[#allocation2 + $0xb]]  ;;  %v77_v17 = vstv %s894_s27  ;;  %v75_v20 = vmul.f32 %v74_v16, %v946_v0  ;;  %v68_v26 = vadd.f32 %v67_v15, %v64_v14 }
  0x27   :  { %s908_s6 = sld [smem:[#allocation2 + $0x19]]  ;;  %v78_v21 = vmul.f32 %v77_v17, %v948_v1  ;;  %v1009_v34 = vmax.f32 %v60_v25, 0.0  ;;  %v81_v36 = vstv %s896_s28 }
  0x28   :  { %s910_s7 = sld [smem:[#allocation2 + $0xc]]  ;;  %v85_v22 = vstv %s898_s29  ;;  %v71_v35 = vadd.f32 %v70_v27, %v68_v26 }
  0x29   :  { %s912_s8 = sld [smem:[#allocation2 + $0xd]]  ;;  %v88_v23 = vstv %s900_s30  ;;  %v86_v28 = vmul.f32 %v85_v22, %v946_v0  ;;  %v79_v32 = vadd.f32 %v78_v21, %v75_v20 }
  0x2a   :  { %s914_s9 = sld [smem:[#allocation2 + $0x1a]]  ;;  %v89_v29 = vmul.f32 %v88_v23, %v948_v1  ;;  %v92_v45 = vstv %s902_s3  ;;  %v1027_v46 = vmax.f32 %v71_v35, 0.0 }
  0x2b   :  { %s916_s10 = sld [smem:[#allocation2 + $0xe]]  ;;  %v96_v30 = vstv %s904_s4  ;;  %v82_v44 = vadd.f32 %v81_v36, %v79_v32 }
  0x2c   :  { %s918_s11 = sld [smem:[#allocation2 + $0xf]]  ;;  %v99_v31 = vstv %s906_s5  ;;  %v97_v37 = vmul.f32 %v96_v30, %v946_v0  ;;  %v90_v41 = vadd.f32 %v89_v29, %v86_v28 }
  0x2d   :  { %s920_s12 = sld [smem:[#allocation2 + $0x1b]]  ;;  %v100_v38 = vmul.f32 %v99_v31, %v948_v1  ;;  %v103_v54 = vstv %s908_s6  ;;  %v1041_v55 = vmax.f32 %v82_v44, 0.0 }
  0x2e   :  { %s922_s13 = sld [smem:[#allocation2 + $0x10]]  ;;  %v107_v42 = vstv %s910_s7  ;;  %v93_v53 = vadd.f32 %v92_v45, %v90_v41 }
  0x2f   :  { %s924_s14 = sld [smem:[#allocation2 + $0x11]]  ;;  %v110_v43 = vstv %s912_s8  ;;  %v101_v49 = vadd.f32 %v100_v38, %v97_v37  ;;  %v108_v50 = vmul.f32 %v107_v42, %v946_v0 }
  0x30   :  { %1496 = sst [smem:[#allocation11_spill]] %s914_s9  ;;  %v111_v51 = vmul.f32 %v110_v43, %v948_v1  ;;  %v1053_v63 = vmax.f32 %v93_v53, 0.0 }
  0x31   :  { %s926_s15 = sld [smem:[#allocation2 + $0x1c]]  ;;  %v118_v56 = vstv %s916_s10  ;;  %v104_v60 = vadd.f32 %v103_v54, %v101_v49 }
  0x32   :  { %1497 = sst [smem:[#allocation12_spill]] %s918_s11  ;;  %v112_v61 = vadd.f32 %v111_v51, %v108_v50  ;;  %v119_v3 = vmul.f32 %v118_v56, %v946_v0 }
  0x33   :  { %1498 = sst [smem:[#allocation13_spill]] %s920_s12  ;;  %v1069_v11 = vmax.f32 %v104_v60, 0.0 }
  0x34   :  { %1499 = sst [smem:[#allocation14_spill]] %s922_s13 }
  0x35   :  { %1500 = sst [smem:[#allocation15_spill]] %s924_s14 }
  0x36   :  { %s928_s16 = sld [smem:[#allocation2 + $0x12]] }
  0x37   :  { %1501 = sst [smem:[#allocation16_spill]] %s926_s15 }
  0x38   :  { %s930_s17 = sld [smem:[#allocation2 + $0x13]] }
  0x39   :  { %s932_s18 = sld [smem:[#allocation2 + $0x1d]] }
  0x3a   :  { %s934_s2 = sld [smem:[#allocation2 + $0x1e]] }
  0x3b   :  { %s936_s9 = sld [smem:[#allocation2 + $0x1f]] }
  0x3c   :  { %s938_s12 = sld [smem:[#allocation2 + $0x20]]  ;;  %v140_v18 = vstv %s928_s16 }
  0x3d   :  { %s940_s11 = sld [smem:[#allocation2 + $0x21]]  ;;  %v141_v31 = vmul.f32 %v140_v18, %v946_v0 }
  0x3e   :  { %1502 = sst [smem:[#allocation17_spill]] %s930_s17 }
  0x3f   :  { %1503 = sst [smem:[#allocation18_spill]] %s932_s18 }
  0x40   :  { %s942_s13 = sld [smem:[#allocation2 + $0x22]]  ;;  %v151_v39 = vstv %s934_s2 }
  0x41   :  { %s944_s14 = sld [smem:[#allocation2 + $0x23]]  ;;  %v154_v40 = vstv %s936_s9  ;;  %v152_v47 = vmul.f32 %v151_v39, %v1007_v33 }
  0x42   :  { %s954_s18 = sld [smem:[#allocation2 + $0x24]]  ;;  %v155_v48 = vmul.f32 %v154_v40, %v1009_v34  ;;  %v158_v52 = vstv %s938_s12 }
  0x43   :  { %s956_s15 = sld [smem:[#allocation2 + $0x25]]  ;;  %v159_v59 = vmul.f32 %v158_v52, %v1027_v46  ;;  %v162_v62 = vstv %s940_s11 }
  0x44   :  { %s958_s17 = sld [smem:[#allocation2 + $0x26]]  ;;  %v156_v58 = vadd.f32 %v155_v48, %v152_v47  ;;  %v163_v8 = vmul.f32 %v162_v62, %v1041_v55 }
  0x45   :  { %s964_s0 = sld [smem:[#allocation2 + $0x27]] }
  0x46   :  { %s966_s19 = sld [smem:[#allocation2 + $0x82]]  ;;  %v160_v7 = vadd.f32 %v159_v59, %v156_v58  ;;  %v166_v13 = vstv %s942_s13 }
  0x47   :  { %s970_s21 = sld [smem:[#allocation2 + $0x28]]  ;;  %v167_v24 = vmul.f32 %v166_v13, %v1053_v63  ;;  %v170_v27 = vstv %s944_s14 }
  0x48   :  { %s972_s22 = sld [smem:[#allocation2 + $0x29]]  ;;  %v164_v23 = vadd.f32 %v163_v8, %v160_v7  ;;  %v171_v42 = vmul.f32 %v170_v27, %v1069_v11 }
  0x49   :  { %s984_s24 = sld [smem:[#allocation2 + $0x2c]] }
  0x4a   :  { %1504 = sst [smem:[#allocation19_spill]] %s958_s17  ;;  %v168_v41 = vadd.f32 %v167_v24, %v164_v23 }
  0x4b   :  { %1505 = sst [smem:[#allocation20_spill]] %s964_s0 }
  0x4c   :  { %1506 = sst [smem:[#allocation21_spill]] %s966_s19  ;;  %v172_v53 = vadd.f32 %v171_v42, %v168_v41 }
  0x4d   :  { %s974_s17 = sld [smem:[#allocation2 + $0x2a]]  ;;  %v194_v9 = vstv %s970_s21 }
  0x4e   :  { %s980_s19 = sld [smem:[#allocation2 + $0x2b]]  ;;  %v197_v10 = vstv %s972_s22  ;;  %v195_v20 = vmul.f32 %v194_v9, %v1007_v33 }
  0x4f   :  { %s986_s1 = sld [smem:[#allocation2 + $0x2d]]  ;;  %v198_v21 = vmul.f32 %v197_v10, %v1009_v34  ;;  %v209_v56 = vstv %s984_s24 }
  0x50   :  { %s992_s0 = sld [smem:[#allocation2 + $0x2e]] }
  0x51   :  { %s994_s20 = sld [smem:[#allocation2 + $0x2f]]  ;;  %v199_v38 = vadd.f32 %v198_v21, %v195_v20 }
  0x52   :  { %s997_s23 = sld [smem:[#allocation2 + $0x30]] }
  0x53   :  { %s1003_s26 = sld [smem:[#allocation2 + $0x31]]  ;;  %v201_v25 = vstv %s974_s17 }
  0x54   :  { %s1005_s27 = sld [smem:[#allocation2 + $0x83]]  ;;  %v202_v39 = vmul.f32 %v201_v25, %v1027_v46  ;;  %v205_v43 = vstv %s980_s19 }
  0x55   :  { %s1012_s25 = sld [smem:[#allocation2 + $0x32]]  ;;  %v206_v51 = vmul.f32 %v205_v43, %v1041_v55  ;;  %v213_v7 = vstv %s986_s1 }
  0x56   :  { %s1018_s29 = sld [smem:[#allocation2 + $0x33]]  ;;  %v203_v50 = vadd.f32 %v202_v39, %v199_v38  ;;  %v214_v18 = vmul.f32 %v213_v7, %v1069_v11  ;;  %v217_v20 = vstv %s992_s0 }
  0x57   :  { %s1022_s30 = sld [smem:[#allocation2 + $0x34]] }
  0x58   :  { %s1025_s28 = sld [smem:[#allocation2 + $0x35]] }
  0x59   :  { %1507 = sst [smem:[#allocation22_spill]] %s1003_s26 }
  0x5a   :  { %1508 = sst [smem:[#allocation23_spill]] %s1005_s27 }
  0x5b   :  { %s1509_s4 = sld [smem:[#allocation12_spill]]  ;;  %v237_v16 = vstv %s1012_s25 }
  0x5c   :  { %s1031_s2 = sld [smem:[#allocation2 + $0x36]]  ;;  %v240_v17 = vstv %s1018_s29  ;;  %v238_v28 = vmul.f32 %v237_v16, %v1007_v33 }
  0x5d   :  { %s1036_s3 = sld [smem:[#allocation2 + $0x37]]  ;;  %v241_v29 = vmul.f32 %v240_v17, %v1009_v34  ;;  %v244_v35 = vstv %s1022_s30 }
  0x5e   :  { %s1510_s5 = sld [smem:[#allocation11_spill]]  ;;  %v245_v44 = vmul.f32 %v244_v35, %v1027_v46  ;;  %v248_v47 = vstv %s1025_s28 }
  0x5f   :  { %s1039_s7 = sld [smem:[#allocation2 + $0x38]]  ;;  %v249_v59 = vmul.f32 %v248_v47, %v1041_v55 }
  0x60   :  { %s1511_s8 = sld [smem:[#allocation14_spill]] }
  0x61   :  { %s1043_s9 = sld [smem:[#allocation2 + $0x39]]  ;;  %v121_v57 = vstv %s1509_s4 }
  0x62   :  { %s1512_s27 = sld [smem:[#allocation15_spill]]  ;;  %v122_v4 = vmul.f32 %v121_v57, %v948_v1  ;;  %v178_v57 = vstv %s956_s15 }
  0x63   :  { %s1048_s12 = sld [smem:[#allocation2 + $0x3a]] }
  0x64   :  { %s1051_s6 = sld [smem:[#allocation2 + $0x3b]]  ;;  %v114_v2 = vstv %s1510_s5  ;;  %v123_v22 = vadd.f32 %v122_v4, %v119_v3  ;;  %v210_v3 = vmul.f32 %v209_v56, %v1053_v63 }
  0x65   :  { %s1056_s26 = sld [smem:[#allocation2 + $0x84]]  ;;  %v115_v12 = vadd.f32 %v114_v2, %v112_v61  ;;  %v252_v61 = vstv %s1031_s2  ;;  %v207_v2 = vadd.f32 %v206_v51, %v203_v50  ;;  %v260_v27 = vstv %s1039_s7 }
  0x66   :  { %v129_v5 = vstv %s1511_s8  ;;  %s1062_s10 = sld [smem:[#allocation2 + $0x3c]]  ;;  %v253_v9 = vmul.f32 %v252_v61, %v1053_v63 }
  0x67   :  { %s1513_s11 = sld [smem:[#allocation17_spill]]  ;;  %v130_v14 = vmul.f32 %v129_v5, %v946_v0  ;;  %v1096_v30 = vmax.f32 %v115_v12, 0.0  ;;  %v174_v0 = vstv %s954_s18  ;;  %v211_v17 = vadd.f32 %v210_v3, %v207_v2 }
  0x68   :  { %v132_v6 = vstv %s1512_s27  ;;  %s1067_s4 = sld [smem:[#allocation2 + $0x3d]]  ;;  %v264_v42 = vstv %s1043_s9 }
  0x69   :  { %s1072_s5 = sld [smem:[#allocation2 + $0x3e]]  ;;  %v133_v15 = vmul.f32 %v132_v6, %v948_v1  ;;  %v175_v54 = vmul.f32 %v174_v0, %v1096_v30  ;;  %v268_v56 = vstv %s1048_s12 }
  0x6a   :  { %s1514_s27 = sld [smem:[#allocation13_spill]]  ;;  %v272_v7 = vstv %s1051_s6 }
  0x6b   :  { %s1078_s8 = sld [smem:[#allocation2 + $0x3f]]  ;;  %v134_v36 = vadd.f32 %v133_v15, %v130_v14  ;;  %v176_v4 = vadd.f32 %v175_v54, %v172_v53  ;;  %v256_v14 = vstv %s1036_s3 }
  0x6c   :  { %s1084_s13 = sld [smem:[#allocation2 + $0x40]]  ;;  %v280_v10 = vstv %s1062_s10  ;;  %v257_v24 = vmul.f32 %v256_v14, %v1069_v11 }
  0x6d   :  { %v143_v19 = vstv %s1513_s11  ;;  %s1515_s21 = sld [smem:[#allocation16_spill]]  ;;  %v281_v21 = vmul.f32 %v280_v10, %v1007_v33 }
  0x6e   :  { %s1088_s22 = sld [smem:[#allocation2 + $0x41]]  ;;  %v144_v32 = vmul.f32 %v143_v19, %v948_v1  ;;  %v242_v1 = vadd.f32 %v241_v29, %v238_v28  ;;  %v283_v12 = vstv %s1067_s4  ;;  %v215_v28 = vadd.f32 %v214_v18, %v211_v17 }
  0x6f   :  { %s1094_s16 = sld [smem:[#allocation2 + $0x42]]  ;;  %v287_v25 = vstv %s1072_s5  ;;  %v218_v29 = vmul.f32 %v217_v20, %v1096_v30 }
  0x70   :  { %v125_v26 = vstv %s1514_s27  ;;  %s1101_s17 = sld [smem:[#allocation2 + $0x43]]  ;;  %v145_v45 = vadd.f32 %v144_v32, %v141_v31  ;;  %v246_v58 = vadd.f32 %v245_v44, %v242_v1  ;;  %v288_v38 = vmul.f32 %v287_v25, %v1027_v46 }
  0x71   :  { %s1516_s14 = sld [smem:[#allocation18_spill]]  ;;  %v126_v40 = vadd.f32 %v125_v26, %v123_v22  ;;  %v284_v22 = vmul.f32 %v283_v12, %v1009_v34  ;;  %v291_v41 = vstv %s1078_s8  ;;  %v219_v44 = vadd.f32 %v218_v29, %v215_v28 }
  0x72   :  { %s1105_s25 = sld [smem:[#allocation2 + $0x44]]  ;;  %v250_v8 = vadd.f32 %v249_v59, %v246_v58  ;;  %v292_v51 = vmul.f32 %v291_v41, %v1041_v55 }
  0x73   :  { %v136_v37 = vstv %s1515_s21  ;;  %s1109_s29 = sld [smem:[#allocation2 + $0x45]]  ;;  %v1122_v52 = vmax.f32 %v126_v40, 0.0  ;;  %v261_v40 = vmul.f32 %v260_v27, %v1096_v30 }
  0x74   :  { %s1113_s30 = sld [smem:[#allocation2 + $0x85]]  ;;  %v137_v48 = vadd.f32 %v136_v37, %v134_v36  ;;  %v254_v23 = vadd.f32 %v253_v9, %v250_v8  ;;  %v221_v36 = vstv %s994_s20  ;;  %v285_v37 = vadd.f32 %v284_v22, %v281_v21 }
  0x75   :  { %s1116_s11 = sld [smem:[#allocation2 + $0x46]]  ;;  %v179_v5 = vmul.f32 %v178_v57, %v1122_v52  ;;  %v265_v54 = vmul.f32 %v264_v42, %v1122_v52  ;;  %v295_v57 = vstv %s1084_s13  ;;  %v299_v12 = vstv %s1088_s22 }
  0x76   :  { %s1120_s19 = sld [smem:[#allocation2 + $0x47]]  ;;  %v1135_v62 = vmax.f32 %v137_v48, 0.0  ;;  %v258_v39 = vadd.f32 %v257_v24, %v254_v23  ;;  %v289_v50 = vadd.f32 %v288_v38, %v285_v37  ;;  %v296_v9 = vmul.f32 %v295_v57, %v1053_v63 }
  0x77   :  { %v147_v49 = vstv %s1516_s14  ;;  %s1518_s18 = sld [smem:[#allocation19_spill]]  ;;  %v180_v19 = vadd.f32 %v179_v5, %v176_v4  ;;  %v303_v28 = vstv %s1094_s16  ;;  %v307_v38 = vstv %s1101_s17 }
  0x78   :  { %s1126_s27 = sld [smem:[#allocation2 + $0x48]]  ;;  %v148_v60 = vadd.f32 %v147_v49, %v145_v45  ;;  %v222_v45 = vmul.f32 %v221_v36, %v1122_v52  ;;  %v225_v49 = vstv %s997_s23  ;;  %v262_v53 = vadd.f32 %v261_v40, %v258_v39 }
  0x79   :  { %s1130_s28 = sld [smem:[#allocation2 + $0x49]]  ;;  %v226_v3 = vmul.f32 %v225_v49, %v1135_v62  ;;  %v293_v8 = vadd.f32 %v292_v51, %v289_v50  ;;  %v308_v49 = vmul.f32 %v307_v38, %v1122_v52 }
  0x7a   :  { %1517 = sst [smem:[#allocation12_spill]] %s1113_s30  ;;  %v1150_v13 = vmax.f32 %v148_v60, 0.0  ;;  %v223_v2 = vadd.f32 %v222_v45, %v219_v44  ;;  %v266_v10 = vadd.f32 %v265_v54, %v262_v53  ;;  %v311_v54 = vstv %s1105_s25 }
  0x7b   :  { %s1133_s21 = sld [smem:[#allocation2 + $0x4a]]  ;;  %v323_v31 = vstv %s1116_s11  ;;  %v297_v25 = vadd.f32 %v296_v9, %v293_v8 }
  0x7c   :  { %s1519_s24 = sld [smem:[#allocation20_spill]]  ;;  %v326_v32 = vstv %s1120_s19  ;;  %v324_v43 = vmul.f32 %v323_v31, %v1007_v33  ;;  %v227_v23 = vadd.f32 %v226_v3, %v223_v2  ;;  %v273_v24 = vmul.f32 %v272_v7, %v1150_v13 }
  0x7d   :  { %s1138_s14 = sld [smem:[#allocation2 + $0x4b]]  ;;  %v182_v6 = vstv %s1518_s18  ;;  %v327_v0 = vmul.f32 %v326_v32, %v1009_v34  ;;  %v276_v3 = vstv %s1056_s26 }
  0x7e   :  { %s1143_s15 = sld [smem:[#allocation2 + $0x4c]]  ;;  %v183_v15 = vmul.f32 %v182_v6, %v1135_v62  ;;  %v330_v47 = vstv %s1126_s27  ;;  %v269_v6 = vmul.f32 %v268_v56, %v1135_v62 }
  0x7f   :  { %s1148_s2 = sld [smem:[#allocation2 + $0x4d]]  ;;  %v328_v58 = vadd.f32 %v327_v0, %v324_v43  ;;  %v331_v59 = vmul.f32 %v330_v47, %v1027_v46  ;;  %v334_v5 = vstv %s1130_s28  ;;  %v304_v43 = vmul.f32 %v303_v28, %v1096_v30 }
  0x80   :  { %s1153_s30 = sld [smem:[#allocation2 + $0x4e]]  ;;  %v184_v35 = vadd.f32 %v183_v15, %v180_v19  ;;  %v335_v17 = vmul.f32 %v334_v5, %v1041_v55  ;;  %v270_v27 = vadd.f32 %v269_v6, %v266_v10 }
  0x81   :  { %s1158_s1 = sld [smem:[#allocation2 + $0x4f]]  ;;  %v338_v22 = vstv %s1133_s21 }
  0x82   :  { %v186_v16 = vstv %s1519_s24  ;;  %s1163_s3 = sld [smem:[#allocation2 + $0x86]] }
  0x83   :  { %s1167_s10 = sld [smem:[#allocation2 + $0x50]]  ;;  %v187_v26 = vmul.f32 %v186_v16, %v1150_v13  ;;  %v332_v16 = vadd.f32 %v331_v59, %v328_v58  ;;  %v342_v39 = vstv %s1138_s14  ;;  %v274_v59 = vadd.f32 %v273_v24, %v270_v27 }
  0x84   :  { %s1171_s4 = sld [smem:[#allocation2 + $0x51]]  ;;  %v343_v51 = vmul.f32 %v342_v39, %v1069_v11  ;;  %v346_v56 = vstv %s1143_s15 }
  0x85   :  { %s1520_s0 = sld [smem:[#allocation21_spill]]  ;;  %v188_v48 = vadd.f32 %v187_v26, %v184_v35  ;;  %v300_v26 = vmul.f32 %v299_v12, %v1069_v11  ;;  %v336_v32 = vadd.f32 %v335_v17, %v332_v16  ;;  %v339_v35 = vmul.f32 %v338_v22, %v1053_v63 }
  0x86   :  { %s1176_s18 = sld [smem:[#allocation2 + $0x52]]  ;;  %v347_v9 = vmul.f32 %v346_v56, %v1096_v30  ;;  %v312_v12 = vmul.f32 %v311_v54, %v1135_v62  ;;  %v1294_v17 = vadd.f32 %v276_v3, %v274_v59  ;;  %v354_v22 = vstv %s1153_s30 }
  0x87   :  { %s1180_s5 = sld [smem:[#allocation2 + $0x53]]  ;;  %v301_v42 = vadd.f32 %v300_v26, %v297_v25  ;;  %v340_v50 = vadd.f32 %v339_v35, %v336_v32 }
  0x88   :  { %s1184_s7 = sld [smem:[#allocation2 + $0x54]]  ;;  %v278_v56 = vmax.f32 %v1294_v17, 0.0 }
  0x89   :  { %s1189_s20 = sld [smem:[#allocation2 + $0x55]]  ;;  %v366_v60 = vstv %s1167_s10  ;;  %v344_v8 = vadd.f32 %v343_v51, %v340_v50 }
  0x8a   :  { %s1194_s11 = sld [smem:[#allocation2 + $0x56]]  ;;  %v369_v61 = vstv %s1171_s4  ;;  %v367_v14 = vmul.f32 %v366_v60, %v1007_v33  ;;  %v305_v60 = vadd.f32 %v304_v43, %v301_v42 }
  0x8b   :  { %v190_v1 = vstv %s1520_s0  ;;  %s1521_s9 = sld [smem:[#allocation22_spill]]  ;;  %v370_v15 = vmul.f32 %v369_v61, %v1009_v34  ;;  %v315_v61 = vstv %s1109_s29  ;;  %v348_v26 = vadd.f32 %v347_v9, %v344_v8 }
  0x8c   :  { %s1198_s8 = sld [smem:[#allocation2 + $0x57]]  ;;  %v373_v18 = vstv %s1176_s18  ;;  %v1229_v19 = vadd.f32 %v190_v1, %v188_v48  ;;  %v362_v9 = vstv %s1163_s3 }
  0x8d   :  { %s1203_s19 = sld [smem:[#allocation2 + $0x58]]  ;;  %v371_v29 = vadd.f32 %v370_v15, %v367_v14  ;;  %v374_v31 = vmul.f32 %v373_v18, %v1027_v46  ;;  %v377_v36 = vstv %s1180_s5  ;;  %v316_v14 = vmul.f32 %v315_v61, %v1150_v13 }
  0x8e   :  { %s1208_s23 = sld [smem:[#allocation2 + $0x59]]  ;;  %v192_v44 = vmax.f32 %v1229_v19, 0.0  ;;  %v378_v48 = vmul.f32 %v377_v36, %v1041_v55  ;;  %v381_v53 = vstv %s1184_s7  ;;  %v309_v18 = vadd.f32 %v308_v49, %v305_v60 }
  0x8f   :  { %s1213_s27 = sld [smem:[#allocation2 + $0x87]]  ;;  %v375_v47 = vadd.f32 %v374_v31, %v371_v29  ;;  %v382_v6 = vmul.f32 %v381_v53, %v1053_v63  ;;  %v385_v10 = vstv %s1189_s20 }
  0x90   :  { %s1522_s12 = sld [smem:[#allocation23_spill]]  ;;  %v386_v24 = vmul.f32 %v385_v10, %v1069_v11  ;;  %v389_v27 = vstv %s1194_s11 }
  0x91   :  { %v229_v4 = vstv %s1521_s9  ;;  %s1218_s13 = sld [smem:[#allocation2 + $0x5a]]  ;;  %v379_v5 = vadd.f32 %v378_v48, %v375_v47  ;;  %v390_v43 = vmul.f32 %v389_v27, %v1096_v30 }
  0x92   :  { %s1223_s24 = sld [smem:[#allocation2 + $0x5b]]  ;;  %v230_v20 = vmul.f32 %v229_v4, %v1150_v13  ;;  %v350_v4 = vstv %s1148_s2  ;;  %v393_v47 = vstv %s1198_s8 }
  0x93   :  { %s1227_s6 = sld [smem:[#allocation2 + $0x5c]]  ;;  %v394_v61 = vmul.f32 %v393_v47, %v1122_v52 }
  0x94   :  { %s1234_s22 = sld [smem:[#allocation2 + $0x5d]]  ;;  %v231_v45 = vadd.f32 %v230_v20, %v227_v23  ;;  %v351_v20 = vmul.f32 %v350_v4, %v1122_v52  ;;  %v383_v23 = vadd.f32 %v382_v6, %v379_v5 }
  0x95   :  { %s1238_s28 = sld [smem:[#allocation2 + $0x5e]] }
  0x96   :  { %v233_v21 = vstv %s1522_s12  ;;  %s1242_s21 = sld [smem:[#allocation2 + $0x5f]]  ;;  %v387_v42 = vadd.f32 %v386_v24, %v383_v23 }
  0x97   :  { %v409_v37 = vstv %s1218_s13  ;;  %s1247_s10 = sld [smem:[#allocation2 + $0x60]]  ;;  %v1283_v7 = vadd.f32 %v233_v21, %v231_v45  ;;  %v358_v45 = vstv %s1158_s1 }
  0x98   :  { %v410_v40 = vmul.f32 %v409_v37, %v1007_v33  ;;  %v412_v41 = vstv %s1223_s24  ;;  %s1253_s16 = sld [smem:[#allocation2 + $0x61]]  ;;  %v313_v37 = vadd.f32 %v312_v12, %v309_v18  ;;  %v391_v60 = vadd.f32 %v390_v43, %v387_v42 }
  0x99   :  { %v413_v0 = vmul.f32 %v412_v41, %v1009_v34  ;;  %v416_v1 = vstv %s1227_s6  ;;  %s1258_s4 = sld [smem:[#allocation2 + $0x62]]  ;;  %v355_v41 = vmul.f32 %v354_v22, %v1135_v62  ;;  %v235_v54 = vmax.f32 %v1283_v7, 0.0 }
  0x9a   :  { %s1262_s17 = sld [smem:[#allocation2 + $0x63]]  ;;  %v417_v58 = vmul.f32 %v416_v1, %v1027_v46  ;;  %v420_v2 = vstv %s1234_s22  ;;  %v352_v1 = vadd.f32 %v351_v20, %v348_v26  ;;  %v317_v59 = vadd.f32 %v316_v14, %v313_v37 }
  0x9b   :  { %s1267_s14 = sld [smem:[#allocation2 + $0x88]]  ;;  %v414_v57 = vadd.f32 %v413_v0, %v410_v40  ;;  %v421_v16 = vmul.f32 %v420_v2, %v1041_v55  ;;  %v424_v21 = vstv %s1238_s28  ;;  %v397_v2 = vstv %s1203_s19 }
  0x9c   :  { %s1272_s0 = sld [smem:[#allocation2 + $0x64]]  ;;  %v425_v32 = vmul.f32 %v424_v21, %v1053_v63  ;;  %v428_v38 = vstv %s1242_s21  ;;  %v359_v3 = vmul.f32 %v358_v45, %v1150_v13  ;;  %v356_v8 = vadd.f32 %v355_v41, %v352_v1 }
  0x9d   :  { %s1276_s18 = sld [smem:[#allocation2 + $0x65]]  ;;  %v418_v15 = vadd.f32 %v417_v58, %v414_v57  ;;  %v429_v50 = vmul.f32 %v428_v38, %v1069_v11  ;;  %v432_v58 = vstv %s1247_s10  ;;  %v398_v14 = vmul.f32 %v397_v2, %v1135_v62 }
  0x9e   :  { %s1281_s25 = sld [smem:[#allocation2 + $0x66]]  ;;  %v433_v12 = vmul.f32 %v432_v58, %v1096_v30  ;;  %v395_v20 = vadd.f32 %v394_v61, %v391_v60  ;;  %v405_v2 = vstv %s1213_s27 }
  0x9f   :  { %s1287_s29 = sld [smem:[#allocation2 + $0x67]]  ;;  %v422_v31 = vadd.f32 %v421_v16, %v418_v15  ;;  %v401_v15 = vstv %s1208_s23  ;;  %v436_v16 = vstv %s1253_s16 }
  0xa0   :  { %s1292_s26 = sld [smem:[#allocation2 + $0x68]]  ;;  %v399_v47 = vadd.f32 %v398_v14, %v395_v20 }
  0xa1   :  { %s1298_s15 = sld [smem:[#allocation2 + $0x69]]  ;;  %v426_v49 = vadd.f32 %v425_v32, %v422_v31 }
  0xa2   :  { %v452_v25 = vstv %s1272_s0  ;;  %s1303_s2 = sld [smem:[#allocation2 + $0x6a]] }
  0xa3   :  { %v453_v28 = vmul.f32 %v452_v25, %v1007_v33  ;;  %v455_v29 = vstv %s1276_s18  ;;  %s1308_s5 = sld [smem:[#allocation2 + $0x6b]]  ;;  %v430_v10 = vadd.f32 %v429_v50, %v426_v49 }
  0xa4   :  { %v456_v35 = vmul.f32 %v455_v29, %v1009_v34  ;;  %v459_v36 = vstv %s1281_s25  ;;  %s1313_s30 = sld [smem:[#allocation2 + $0x6c]]  ;;  %v437_v29 = vmul.f32 %v436_v16, %v1122_v52 }
  0xa5   :  { %v460_v39 = vmul.f32 %v459_v36, %v1027_v46  ;;  %v463_v40 = vstv %s1287_s29  ;;  %s1318_s7 = sld [smem:[#allocation2 + $0x6d]] }
  0xa6   :  { %s1523_s20 = sld [smem:[#allocation12_spill]]  ;;  %v457_v0 = vadd.f32 %v456_v35, %v453_v28  ;;  %v464_v48 = vmul.f32 %v463_v40, %v1041_v55  ;;  %v467_v53 = vstv %s1292_s26  ;;  %v434_v28 = vadd.f32 %v433_v12, %v430_v10 }
  0xa7   :  { %s1322_s11 = sld [smem:[#allocation2 + $0x89]]  ;;  %v468_v5 = vmul.f32 %v467_v53, %v1053_v63  ;;  %v471_v6 = vstv %s1298_s15  ;;  %v440_v35 = vstv %s1258_s4  ;;  %v402_v40 = vmul.f32 %v401_v15, %v1150_v13 }
  0xa8   :  { %s1327_s9 = sld [smem:[#allocation2 + $0x6e]]  ;;  %v461_v51 = vadd.f32 %v460_v39, %v457_v0  ;;  %v472_v21 = vmul.f32 %v471_v6, %v1069_v11  ;;  %v475_v25 = vstv %s1303_s2  ;;  %v360_v39 = vadd.f32 %v359_v3, %v356_v8 }
  0xa9   :  { %s1331_s12 = sld [smem:[#allocation2 + $0x6f]]  ;;  %v476_v41 = vmul.f32 %v475_v25, %v1096_v30  ;;  %v479_v0 = vstv %s1308_s5  ;;  %v441_v49 = vmul.f32 %v440_v35, %v1135_v62  ;;  %v444_v53 = vstv %s1262_s17 }
  0xaa   :  { %s1337_s1 = sld [smem:[#allocation2 + $0x70]]  ;;  %v465_v4 = vadd.f32 %v464_v48, %v461_v51  ;;  %v438_v48 = vadd.f32 %v437_v29, %v434_v28  ;;  %v1397_v61 = vadd.f32 %v362_v9, %v360_v39  ;;  %v480_v3 = vmul.f32 %v479_v0, %v1122_v52 }
  0xab   :  { %s1341_s8 = sld [smem:[#allocation2 + $0x71]]  ;;  %v403_v8 = vadd.f32 %v402_v40, %v399_v47  ;;  %v445_v9 = vmul.f32 %v444_v53, %v1150_v13 }
  0xac   :  { %v319_v57 = vstv %s1523_s20  ;;  %s1346_s13 = sld [smem:[#allocation2 + $0x72]]  ;;  %v469_v24 = vadd.f32 %v468_v5, %v465_v4  ;;  %v442_v10 = vadd.f32 %v441_v49, %v438_v48  ;;  %v364_v0 = vmax.f32 %v1397_v61, 0.0 }
  0xad   :  { %s1350_s24 = sld [smem:[#allocation2 + $0x73]]  ;;  %v1391_v51 = vadd.f32 %v319_v57, %v317_v59  ;;  %v483_v57 = vstv %s1313_s30 }
  0xae   :  { %v495_v18 = vstv %s1327_s9  ;;  %s1356_s19 = sld [smem:[#allocation2 + $0x74]]  ;;  %v473_v43 = vadd.f32 %v472_v21, %v469_v24  ;;  %v484_v20 = vmul.f32 %v483_v57, %v1135_v62 }
  0xaf   :  { %v496_v22 = vmul.f32 %v495_v18, %v1007_v33  ;;  %v498_v23 = vstv %s1331_s12  ;;  %s1361_s3 = sld [smem:[#allocation2 + $0x75]] }
  0xb0   :  { %v499_v26 = vmul.f32 %v498_v23, %v1009_v34  ;;  %v502_v27 = vstv %s1337_s1  ;;  %s1366_s23 = sld [smem:[#allocation2 + $0x76]]  ;;  %v477_v5 = vadd.f32 %v476_v41, %v473_v43  ;;  %v321_v43 = vmax.f32 %v1391_v51, 0.0  ;;  %s852_s1 = smov [#allocation7]  }
  0xb1   :  { %v503_v31 = vmul.f32 %v502_v27, %v1027_v46  ;;  %v506_v32 = vstv %s1341_s8  ;;  %s1371_s6 = sld [smem:[#allocation2 + $0x77]]  ;;  %v491_v51 = vstv %s1322_s11  ;;  %s629_s8 = sshll.u32 %s852_s1, 4  ;;  %s630_s8 = int_to_ptr.vmem [resolvable:$true] %s629_s8 }
  0xb2   :  { %v500_v36 = vadd.f32 %v499_v26, %v496_v22  ;;  %v507_v37 = vmul.f32 %v506_v32, %v1041_v55  ;;  %v510_v38 = vstv %s1346_s13  ;;  %s1376_s22 = sld [smem:[#allocation2 + $0x8a]]  ;;  %v481_v24 = vadd.f32 %v480_v3, %v477_v5  ;;  %s822_s13 = scalar_lea.vmem %s630_s8, 128 }
  0xb3   :  { %v514_v42 = vstv %s1350_s24  ;;  %s1381_s28 = sld [smem:[#allocation2 + $0x78]]  ;;  %v511_v45 = vmul.f32 %v510_v38, %v1053_v63  ;;  %p823_p5 = scmp.ne.s32.totalorder %s630_s8, %s822_s13 }
  0xb4   :  { %v504_v1 = vadd.f32 %v503_v31, %v500_v36  ;;  %s1385_s21 = sld [smem:[#allocation2 + $0x79]]  ;;  %v518_v50 = vstv %s1356_s19  ;;  %v515_v60 = vmul.f32 %v514_v42, %v1069_v11  ;;  %v485_v40 = vadd.f32 %v484_v20, %v481_v24  ;;  %p827_p6 = scmp.lt.s32.totalorder %s630_s8, %s630_s8 }
  0xb5   :  { %s1389_s10 = sld [smem:[#allocation2 + $0x7a]]  ;;  %v522_v4 = vstv %s1361_s3  ;;  %v519_v6 = vmul.f32 %v518_v50, %v1096_v30  ;;  %p828_p7 = scmp.lt.s32.totalorder %s822_s13, %s822_s13 }
  0xb6   :  { %v508_v58 = vadd.f32 %v507_v37, %v504_v1  ;;  %s1395_s16 = sld [smem:[#allocation2 + $0x7b]]  ;;  %v523_v15 = vmul.f32 %v522_v4, %v1122_v52  ;;  %v526_v21 = vstv %s1366_s23 }
  0xb7   :  { %s1402_s4 = sld [smem:[#allocation2 + $0x7c]]  ;;  %v527_v35 = vmul.f32 %v526_v21, %v1135_v62  ;;  %v530_v37 = vstv %s1371_s6  ;;  %p829_p8 = por %p828_p7, %p827_p6 }
  0xb8   :  { %v512_v59 = vadd.f32 %v511_v45, %v508_v58  ;;  %s1406_s17 = sld [smem:[#allocation2 + $0x7d]]  ;;  %v531_v48 = vmul.f32 %v530_v37, %v1150_v13 }
  0xb9   :  { %v538_v12 = vstv %s1381_s28  ;;  %s1410_s27 = sld [smem:[#allocation2 + $0x7e]]  ;;  %p830_p9 = pnand %p829_p8, %p823_p5 }
  0xba   :  { %v516_v14 = vadd.f32 %v515_v60, %v512_v59  ;;  %v539_v16 = vmul.f32 %v538_v12, %v1007_v33  ;;  %v541_v18 = vstv %s1385_s21  ;;  %s1415_s0 = sld [smem:[#allocation2 + $0x7f]]  ;;  %v487_v33 = vstv %s1318_s7 }
  0xbb   :  { %v542_v22 = vmul.f32 %v541_v18, %v1009_v34  ;;  %v545_v23 = vstv %s1389_s10  ;;  %s1421_s18 = sld [smem:[#allocation2 + $0x80]]  ;;  %v1432_v34 = vadd.f32 %v405_v2, %v403_v8  ;;  %v488_v41 = vmul.f32 %v487_v33, %v1150_v13 }
  0xbc   :  { %v520_v25 = vadd.f32 %v519_v6, %v516_v14  ;;  %v546_v26 = vmul.f32 %v545_v23, %v1027_v46  ;;  %v549_v27 = vstv %s1395_s16  ;;  %s1425_s25 = sld [smem:[#allocation2 + $0x81]]  ;;  %v446_v46 = vadd.f32 %v445_v9, %v442_v10 }
  0xbd   :  { %v543_v28 = vadd.f32 %v542_v22, %v539_v16  ;;  %v550_v29 = vmul.f32 %v549_v27, %v1041_v55  ;;  %v553_v31 = vstv %s1402_s4  ;;  %s1430_s29 = sld [smem:[#allocation2 + $0x8b]]  ;;  %v448_v55 = vstv %s1267_s14 }
  0xbe   :  { %v524_v32 = vadd.f32 %v523_v15, %v520_v25  ;;  %v557_v36 = vstv %s1406_s17  ;;  %s1436_s26 = sld [smem:[#allocation2 + $0x8c]]  ;;  %v554_v39 = vmul.f32 %v553_v31, %v1053_v63  ;;  %v407_v45 = vmax.f32 %v1432_v34, 0.0 }
  0xbf   :  { %v547_v38 = vadd.f32 %v546_v26, %v543_v28  ;;  %s1440_s15 = sld [smem:[#allocation2 + $0x8d]]  ;;  %v561_v42 = vstv %s1410_s27  ;;  %v558_v63 = vmul.f32 %v557_v36, %v1069_v11  ;;  %v449_v50 = vadd.f32 %v448_v55, %v446_v46 }
  0xc0   :  { %s1445_s2 = sld [smem:[#allocation2 + $0x8e]]  ;;  %v528_v47 = vadd.f32 %v527_v35, %v524_v32  ;;  %v565_v49 = vstv %s1415_s0  ;;  %v562_v58 = vmul.f32 %v561_v42, %v1096_v30  ;;  %v489_v11 = vadd.f32 %v488_v41, %v485_v40 }
  0xc1   :  { %v551_v1 = vadd.f32 %v550_v29, %v547_v38  ;;  %s1450_s5 = sld [smem:[#allocation2 + $0x8f]]  ;;  %v534_v60 = vstv %s1376_s22  ;;  %v569_v61 = vstv %s1421_s18  ;;  %v566_v4 = vmul.f32 %v565_v49, %v1122_v52 }
  0xc2   :  { %s1455_s14 = sld [smem:[#allocation2 + $0x90]]  ;;  %v532_v30 = vadd.f32 %v531_v48, %v528_v47  ;;  %v573_v59 = vstv %s1425_s25  ;;  %v570_v9 = vmul.f32 %v569_v61, %v1135_v62  ;;  %v450_v18 = vmax.f32 %v449_v50, 0.0 }
  0xc3   :  { %v555_v53 = vadd.f32 %v554_v39, %v551_v1  ;;  %s1459_s30 = sld [smem:[#allocation2 + $0x91]]  ;;  %v574_v7 = vmul.f32 %v573_v59, %v1150_v13  ;;  %v577_v23 = vstv %s1430_s29 }
  0xc4   :  { %v581_v2 = vstv %s1436_s26  ;;  %s1464_s7 = sld [smem:[#allocation2 + $0x92]]  ;;  %v535_v62 = vadd.f32 %v534_v60, %v532_v30 }
  0xc5   :  { %v559_v3 = vadd.f32 %v558_v63, %v555_v53  ;;  %v582_v5 = vmul.f32 %v581_v2, %v192_v44  ;;  %v584_v57 = vstv %s1440_s15  ;;  %s1470_s20 = sld [smem:[#allocation2 + $0x93]]  ;;  %v492_v44 = vadd.f32 %v491_v51, %v489_v11 }
  0xc6   :  { %v585_v6 = vmul.f32 %v584_v57, %v235_v54  ;;  %v588_v8 = vstv %s1445_s2  ;;  %s1480_s11 = sld [smem:[#allocation2 + $0x94]]  ;;  %v536_v33 = vmax.f32 %v535_v62, 0.0 }
  0xc7   :  { %v563_v10 = vadd.f32 %v562_v58, %v559_v3  ;;  %v589_v52 = vmul.f32 %v588_v8, %v278_v56  ;;  %v592_v19 = vstv %s1450_s5  ;;  %s787_s9 = sld [smem:[#allocation2 + $0x95]]  ;;  %v493_v22 = vmax.f32 %v492_v44, 0.0 }
  0xc8   :  { %v586_v12 = vadd.f32 %v585_v6, %v582_v5  ;;  %v593_v14 = vmul.f32 %v592_v19, %v321_v43  ;;  %v596_v15 = vstv %s1455_s14  ;;  %s788_s12 = sld [smem:[#allocation2 + $0x96]] }
  0xc9   :  { %v567_v16 = vadd.f32 %v566_v4, %v563_v10  ;;  %v600_v54 = vstv %s1459_s30  ;;  %v597_v56 = vmul.f32 %v596_v15, %v364_v0 }
  0xca   :  { %v590_v17 = vadd.f32 %v589_v52, %v586_v12  ;;  %v604_v21 = vstv %s1464_s7  ;;  %v601_v25 = vmul.f32 %v600_v54, %v407_v45 }
  0xcb   :  { %v571_v20 = vadd.f32 %v570_v9, %v567_v16  ;;  %v608_v27 = vstv %s1470_s20  ;;  %v605_v29 = vmul.f32 %v604_v21, %v450_v18 }
  0xcc   :  { %v594_v24 = vadd.f32 %v593_v14, %v590_v17  ;;  %v612_v13 = vstv %s1480_s11  ;;  %v609_v32 = vmul.f32 %v608_v27, %v493_v22 }
  0xcd   :  { %v575_v26 = vadd.f32 %v574_v7, %v571_v20  ;;  %v616_v36 = vstv %s787_s9  ;;  %v613_v37 = vmul.f32 %v612_v13, %v536_v33 }
  0xce   :  { %v598_v28 = vadd.f32 %v597_v56, %v594_v24  ;;  %v620_v40 = vstv %s788_s12 }
  0xcf   :  { %v578_v31 = vadd.f32 %v577_v23, %v575_v26 }
  0xd0   :  { %v602_v34 = vadd.f32 %v601_v25, %v598_v28 }
  0xd1   :  { %v579_v35 = vmax.f32 %v578_v31, 0.0 }
  0xd2   :  { %v606_v46 = vadd.f32 %v605_v29, %v602_v34 }
  0xd3   :  { %v617_v39 = vmul.f32 %v616_v36, %v579_v35 }
  0xd4   :  { %v610_v38 = vadd.f32 %v609_v32, %v606_v46 }
  0xd6   :  { %v614_v55 = vadd.f32 %v613_v37, %v610_v38 }
  0xd8   :  { %v618_v41 = vadd.f32 %v617_v39, %v614_v55 }
  0xda   :  { %v621_v42 = vadd.f32 %v620_v40, %v618_v41 }
  0xdc   :  { %622 = vst [vmem:[#allocation7] sm:$0xff] %v621_v42 }
  0xdd   :  { %833 = shalt.err (!%p830_p9)
}
  0xde   :  { %s1524_s3 = sld [smem:[#allocation24_spill]] }
  0xe4   :  { %632 = dma.vmem_to_hbm [thread:$0]  %s630_s8, 128, %s1524_s3, [#allocation4]  }
  0xe5   :  { %846 = dma.done.wait [#allocation4], 128  }
  0xe6   :  { %847 = vsyncadd [#allocation4], 4294967168 }
  0xe7   :  { %636 = vsyncpa [#allocation3], 1 }
  0xe8   :  { %637 = vsyncpa [#allocation4], 1 }
  0xe9   :  { %638 = vsyncpa [#allocation5], 1 }

</bundles_post_ra>
